<compile_context>
chip_gen: v7x
topology: tpu7x:2x2x1
jax: 0.10.0
libtpu: 0.0.40
codegen_flags: <defaults>
</compile_context>

<pallas_src>
import functools

import jax
import jax.numpy as jnp
from jax.experimental import pallas as pl
from jax.experimental.pallas import tpu as pltpu


# ----------------------------------------------------------------------------
# Pallas kernel: one GConvGRU step (per grid index t) + ReLU + Linear head
# ----------------------------------------------------------------------------
def _gconv_gru_kernel(l_ref, xh_ref, h0_ref,
                      w1_ref, b1_ref,
                      w2_ref, b2_ref,
                      wlin_ref, blin_ref,
                      o_ref, *, K, CP):
    mxu_dtype = l_ref.dtype            # bf16 fast path or f32 exact path
    L = l_ref[...]                     # [N, N]      rescaled Laplacian (mxu_dtype)
    H = h0_ref[...]                    # [N, CP]     initial hidden state, lane-padded (f32)
    T0 = xh_ref[0]                     # [N, F+CP]   [X_t | H] for this snapshot (f32)

    def cheb_matmul_acc(t0, w_ref):
        """sum_k T_k(L_hat; t0) @ W[k] with f32 accumulation; MXU dots in mxu_dtype.

        Per-order accumulation (no lane-axis concat of the Chebyshev basis).
        """
        acc = jnp.dot(t0.astype(mxu_dtype), w_ref[0],
                      preferred_element_type=jnp.float32)
        if K > 1:
            t_prev = t0.astype(jnp.float32)
            t_cur = jnp.dot(L, t0.astype(mxu_dtype),
                            preferred_element_type=jnp.float32)
            acc += jnp.dot(t_cur.astype(mxu_dtype), w_ref[1],
                           preferred_element_type=jnp.float32)
            for k in range(2, K):
                t_next = (2.0 * jnp.dot(L, t_cur.astype(mxu_dtype),
                                        preferred_element_type=jnp.float32)
                          - t_prev)
                acc += jnp.dot(t_next.astype(mxu_dtype), w_ref[k],
                               preferred_element_type=jnp.float32)
                t_prev, t_cur = t_cur, t_next
        return acc

    # Fused chain over [X | H]: columns are [ z-sum | r-sum | conv_x_h ], each CP wide.
    conv1 = cheb_matmul_acc(T0, w1_ref) + b1_ref[...]            # [N, 3*CP] f32
    Z = jax.nn.sigmoid(conv1[:, 0:CP])                           # update gate (128-lane slice)
    R = jax.nn.sigmoid(conv1[:, CP:2 * CP])                      # reset gate
    conv_xh = conv1[:, 2 * CP:3 * CP]                            # ChebConv_xh(X)

    # Second chain on H * R  ->  ChebConv_hh(H * R)
    conv_hh = cheb_matmul_acc(H * R, w2_ref) + b2_ref[...]       # [N, CP] f32
    H_tilde = jnp.tanh(conv_xh + conv_hh)                        # candidate state

    H_new = Z * H + (1.0 - Z) * H_tilde                          # GRU update
    h_act = jnp.maximum(H_new, 0.0)                              # ReLU
    # TODO(synk): nn.Dropout is treated in eval mode (identity); a training-mode
    #             stochastic mask would use pltpu.prng_seed / pltpu.prng_random_bits.

    out = (jnp.dot(h_act.astype(mxu_dtype), wlin_ref[...],
                   preferred_element_type=jnp.float32)
           + blin_ref[...])                                      # Linear head, [N, OP]
    o_ref[0] = out.astype(o_ref.dtype)                           # full-lane (128) store


# ----------------------------------------------------------------------------
# Glue: dense rescaled Laplacian (sym normalization, lambda_max = 2.0, as in ChebConv)
# ----------------------------------------------------------------------------
def rescaled_laplacian(edge_index, edge_weight, num_nodes, lambda_max=2.0):
    src, dst = edge_index[0], edge_index[1]
    w = jnp.where(src != dst, edge_weight, 0.0)          # remove self-loops
    deg = jnp.zeros((num_nodes,), jnp.float32).at[src].add(w)
    dinv = jnp.where(deg > 0, 1.0 / jnp.sqrt(deg), 0.0)
    norm_w = dinv[src] * w * dinv[dst]
    # Message matrix: out[i] = sum_{edges j->i} norm * x[j]  =>  A[dst, src]
    A = jnp.zeros((num_nodes, num_nodes), jnp.float32).at[dst, src].add(norm_w)
    Lap = jnp.eye(num_nodes, dtype=jnp.float32) - A                    # L = I - A_norm
    return (2.0 / lambda_max) * Lap - jnp.eye(num_nodes, dtype=jnp.float32)


def _round_up_128(v):
    return max(128, ((v + 127) // 128) * 128)


def _pack_params(params, K, F, C, CP, OP, mxu_dtype):
    """Pack ChebConv / Linear weights into lane-dense, matmul-friendly slabs.

    W1[k]  : [F+CP, 3*CP]  rows = [X | H], cols = [z | r | x-part-of-h], gate stride CP.
    W2[k]  : [CP, CP]      ChebConv_hh (operates on H*R).
    Wlin   : [CP, OP]      Linear head, padded to 128-lane output.
    """
    Wx, Wh = params["Wx"], params["Wh"]          # [3, K, F, C], [3, K, C, C]
    bx, bh = params["bx"], params["bh"]          # [3, C]
    O = params["W_lin"].shape[-1]

    W1 = jnp.zeros((K, F + CP, 3 * CP), jnp.float32)
    for g in range(3):                                           # X -> z, r, h
        W1 = W1.at[:, :F, g * CP:g * CP + C].set(Wx[g])
    for g in range(2):                                           # H -> z, r
        W1 = W1.at[:, F:F + C, g * CP:g * CP + C].set(Wh[g])

    b1 = jnp.zeros((1, 3 * CP), jnp.float32)
    b1 = b1.at[0, 0:C].set(bx[0] + bh[0])
    b1 = b1.at[0, CP:CP + C].set(bx[1] + bh[1])
    b1 = b1.at[0, 2 * CP:2 * CP + C].set(bx[2])

    W2 = jnp.zeros((K, CP, CP), jnp.float32).at[:, :C, :C].set(Wh[2])
    b2 = jnp.zeros((1, CP), jnp.float32).at[0, :C].set(bh[2])

    Wlin = jnp.zeros((CP, OP), jnp.float32).at[:C, :O].set(params["W_lin"])
    blin = jnp.zeros((1, OP), jnp.float32).at[0, :O].set(params["b_lin"])

    return (W1.astype(mxu_dtype), b1, W2.astype(mxu_dtype), b2,
            Wlin.astype(mxu_dtype), blin)


# ----------------------------------------------------------------------------
# Wrapper: batched over T independent snapshots (the PyTorch module resets H=0
# every forward, so snapshots are independent -> "parallel" grid axis).
# ----------------------------------------------------------------------------
def recurrent_gcn_forward(x_seq, edge_index, edge_weight, params, K,
                          *, mxu_dtype=jnp.bfloat16, h0=None):
    x_seq = jnp.asarray(x_seq, jnp.float32)
    squeeze = (x_seq.ndim == 2)
    if squeeze:
        x_seq = x_seq[None]
    T, N, F = x_seq.shape
    C = params["Wh"].shape[-1]
    O = params["W_lin"].shape[-1]
    CP = _round_up_128(C)      # lane-dense gate / hidden width
    OP = _round_up_128(O)      # lane-dense head-output width

    # Built once per graph, shared by all T grid steps (resident in VMEM).
    L_hat = rescaled_laplacian(edge_index, edge_weight, N).astype(mxu_dtype)

    if h0 is None:
        h0 = jnp.zeros((N, C), jnp.float32)
    H0 = jnp.zeros((N, CP), jnp.float32).at[:, :C].set(h0)

    # Fused Chebyshev operand [X_t | H0]; concat done here so the kernel never does a
    # lane-axis concatenate.
    XH = jnp.concatenate(
        [x_seq, jnp.broadcast_to(H0[None], (T, N, CP))], axis=2)         # [T, N, F+CP]

    W1, b1, W2, b2, Wlin, blin = _pack_params(params, K, F, C, CP, OP, mxu_dtype)

    # TODO(synk): for large N the dense L_hat (N^2) must be grid-tiled over node rows
    #             (with the Chebyshev basis kept in scratch) to fit v7x's 64 MiB VMEM;
    #             whole-array residency is fine at these demo sizes.
    kernel = functools.partial(_gconv_gru_kernel, K=K, CP=CP)
    grid_spec = pltpu.PrefetchScalarGridSpec(
        num_scalar_prefetch=0,
        grid=(T,),
        in_specs=[
            pl.BlockSpec((N, N), lambda t: (0, 0)),                  # L_hat (shared)
            pl.BlockSpec((1, N, F + CP), lambda t: (t, 0, 0)),       # [X_t | H0]
            pl.BlockSpec((N, CP), lambda t: (0, 0)),                 # H0 (shared)
            pl.BlockSpec((K, F + CP, 3 * CP), lambda t: (0, 0, 0)),  # W1
            pl.BlockSpec((1, 3 * CP), lambda t: (0, 0)),             # b1
            pl.BlockSpec((K, CP, CP), lambda t: (0, 0, 0)),          # W2
            pl.BlockSpec((1, CP), lambda t: (0, 0)),                 # b2
            pl.BlockSpec((CP, OP), lambda t: (0, 0)),                # W_lin
            pl.BlockSpec((1, OP), lambda t: (0, 0)),                 # b_lin
        ],
        out_specs=pl.BlockSpec((1, N, OP), lambda t: (t, 0, 0)),
    )
    out_pad = pl.pallas_call(
        kernel,
        out_shape=jax.ShapeDtypeStruct((T, N, OP), jnp.float32),
        grid_spec=grid_spec,
        compiler_params=pltpu.CompilerParams(
            dimension_semantics=("parallel",)),
    )(L_hat, XH, H0, W1, b1, W2, b2, Wlin, blin)

    out = out_pad[:, :, :O]                      # drop lane padding
    return out[0] if squeeze else out


# ----------------------------------------------------------------------------
# Pure-JAX reference (same math) for a sanity check
# ----------------------------------------------------------------------------
def _reference(x_seq, edge_index, edge_weight, params, K):
    N = x_seq.shape[1]
    C = params["Wh"].shape[-1]
    L_hat = rescaled_laplacian(edge_index, edge_weight, N)

    def cheb_conv(T0, W, b):
        Ts = [T0]
        if K > 1:
            Ts.append(L_hat @ T0)
        for _ in range(2, K):
            Ts.append(2.0 * (L_hat @ Ts[-1]) - Ts[-2])
        return sum(Ts[k] @ W[k] for k in range(K)) + b

    def step(x):
        H = jnp.zeros((N, C), jnp.float32)
        Z = jax.nn.sigmoid(cheb_conv(x, params["Wx"][0], params["bx"][0])
                           + cheb_conv(H, params["Wh"][0], params["bh"][0]))
        R = jax.nn.sigmoid(cheb_conv(x, params["Wx"][1], params["bx"][1])
                           + cheb_conv(H, params["Wh"][1], params["bh"][1]))
        H_tilde = jnp.tanh(cheb_conv(x, params["Wx"][2], params["bx"][2])
                           + cheb_conv(H * R, params["Wh"][2], params["bh"][2]))
        Hn = Z * H + (1.0 - Z) * H_tilde
        h = jnp.maximum(Hn, 0.0)
        return h @ params["W_lin"] + params["b_lin"]

    return jax.vmap(step)(x_seq)


if __name__ == "__main__":
    # RecurrentGCN(node_features=4, filters=32, k=3, output_size=8), T=8 snapshots.
    N_NODES, NODE_FEATURES, FILTERS, K, OUTPUT_SIZE, T_STEPS = 16, 4, 32, 3, 8, 8

    key = jax.random.PRNGKey(0)
    k_x, k_w, k_wx, k_wh, k_bx, k_bh, k_wl, k_bl = jax.random.split(key, 8)

    # Node-feature snapshots and a ring graph (both directions), deterministic weights.
    x_seq = jax.random.normal(k_x, (T_STEPS, N_NODES, NODE_FEATURES), jnp.float32)
    src = jnp.arange(N_NODES, dtype=jnp.int32)
    dst = (src + 1) % N_NODES
    edge_index = jnp.stack([jnp.concatenate([src, dst]),
                            jnp.concatenate([dst, src])])            # [2, 2N]
    edge_weight = jax.random.uniform(k_w, (2 * N_NODES,), jnp.float32,
                                     minval=0.5, maxval=1.5)

    # Deterministic parameter init (shapes follow GConvGRU / ChebConv / Linear).
    scale = 0.1
    params = {
        "Wx": scale * jax.random.normal(k_wx, (3, K, NODE_FEATURES, FILTERS), jnp.float32),
        "Wh": scale * jax.random.normal(k_wh, (3, K, FILTERS, FILTERS), jnp.float32),
        "bx": scale * jax.random.normal(k_bx, (3, FILTERS), jnp.float32),
        "bh": scale * jax.random.normal(k_bh, (3, FILTERS), jnp.float32),
        "W_lin": scale * jax.random.normal(k_wl, (FILTERS, OUTPUT_SIZE), jnp.float32),
        "b_lin": scale * jax.random.normal(k_bl, (OUTPUT_SIZE,), jnp.float32),
    }

    ref = _reference(x_seq, edge_index, edge_weight, params, K)

    # Exact path (f32 MXU operands): tight parity vs. the JAX reference.
    out_f32 = recurrent_gcn_forward(x_seq, edge_index, edge_weight, params, K,
                                    mxu_dtype=jnp.float32)
    out_f32 = jax.block_until_ready(out_f32)
    assert out_f32.shape == (T_STEPS, N_NODES, OUTPUT_SIZE)
    assert jnp.allclose(out_f32, ref, atol=1e-4, rtol=1e-4), \
        "f32 kernel mismatch vs. JAX reference"

    # Fast path (bf16 MXU operands, f32 accumulation / gate math): looser tolerance.
    out_bf16 = recurrent_gcn_forward(x_seq, edge_index, edge_weight, params, K,
                                     mxu_dtype=jnp.bfloat16)
    out_bf16 = jax.block_until_ready(out_bf16)
    assert out_bf16.shape == (T_STEPS, N_NODES, OUTPUT_SIZE)
    assert jnp.allclose(out_bf16, ref, atol=3e-2, rtol=3e-2), \
        "bf16 kernel mismatch vs. JAX reference"

    print("KERNEL_OK")
</pallas_src>

<mosaic_0001>
module attributes {stable_mosaic.version = 11 : i64} {
  func.func @_gconv_gru_kernel(%arg0: i32, %arg1: memref<16x16xf32, #tpu.memory_space<vmem>>, %arg2: memref<1x16x132xf32, #tpu.memory_space<vmem>>, %arg3: memref<16x128xf32, #tpu.memory_space<vmem>>, %arg4: memref<3x132x384xf32, #tpu.memory_space<vmem>>, %arg5: memref<1x384xf32, #tpu.memory_space<vmem>>, %arg6: memref<3x128x128xf32, #tpu.memory_space<vmem>>, %arg7: memref<1x128xf32, #tpu.memory_space<vmem>>, %arg8: memref<128x128xf32, #tpu.memory_space<vmem>>, %arg9: memref<1x128xf32, #tpu.memory_space<vmem>>, %arg10: memref<1x16x128xf32, #tpu.memory_space<vmem>>) attributes {dimension_semantics = [#tpu.dimension_semantics<parallel>], iteration_bounds = array<i64: 8>, scalar_prefetch = 0 : i64, scratch_operands = 0 : i64, tpu.core_type = #tpu.core_type<tc>, window_params = [{pipeline_mode = #tpu.pipeline_mode<synchronous>, transform_indices = @transform_0, window_bounds = array<i64: 16, 16>}, {transform_indices = @transform_1, window_bounds = array<i64: 1, 16, 132>}, {pipeline_mode = #tpu.pipeline_mode<synchronous>, transform_indices = @transform_2, window_bounds = array<i64: 16, 128>}, {pipeline_mode = #tpu.pipeline_mode<synchronous>, transform_indices = @transform_3, window_bounds = array<i64: 3, 132, 384>}, {pipeline_mode = #tpu.pipeline_mode<synchronous>, transform_indices = @transform_4, window_bounds = array<i64: 1, 384>}, {pipeline_mode = #tpu.pipeline_mode<synchronous>, transform_indices = @transform_5, window_bounds = array<i64: 3, 128, 128>}, {pipeline_mode = #tpu.pipeline_mode<synchronous>, transform_indices = @transform_6, window_bounds = array<i64: 1, 128>}, {pipeline_mode = #tpu.pipeline_mode<synchronous>, transform_indices = @transform_7, window_bounds = array<i64: 128, 128>}, {pipeline_mode = #tpu.pipeline_mode<synchronous>, transform_indices = @transform_8, window_bounds = array<i64: 1, 128>}, {transform_indices = @transform_9, window_bounds = array<i64: 1, 16, 128>}]} {
    %c0 = arith.constant 0 : index
    %c0_0 = arith.constant 0 : index
    %0 = vector.load %arg1[%c0, %c0_0] : memref<16x16xf32, #tpu.memory_space<vmem>>, vector<16x16xf32>
    %c0_1 = arith.constant 0 : index
    %c0_2 = arith.constant 0 : index
    %1 = vector.load %arg3[%c0_1, %c0_2] : memref<16x128xf32, #tpu.memory_space<vmem>>, vector<16x128xf32>
    %c0_3 = arith.constant 0 : index
    %c0_4 = arith.constant 0 : index
    %c0_5 = arith.constant 0 : index
    %2 = vector.load %arg2[%c0_3, %c0_4, %c0_5] : memref<1x16x132xf32, #tpu.memory_space<vmem>>, vector<1x16x132xf32>
    %3 = vector.shape_cast %2 : vector<1x16x132xf32> to vector<16x132xf32>
    %c0_6 = arith.constant 0 : index
    %c0_7 = arith.constant 0 : index
    %c0_8 = arith.constant 0 : index
    %4 = vector.load %arg4[%c0_6, %c0_7, %c0_8] : memref<3x132x384xf32, #tpu.memory_space<vmem>>, vector<1x132x384xf32>
    %5 = vector.shape_cast %4 : vector<1x132x384xf32> to vector<132x384xf32>
    %cst = arith.constant dense<0.000000e+00> : vector<16x384xf32>
    %6 = tpu.matmul %3, %5, %cst {dimension_numbers = #tpu.dot_dimension_numbers<[1], [0], [0], [1], [0, 0, 1, 1], [], []>} : vector<16x132xf32>, vector<132x384xf32>, vector<16x384xf32> -> vector<16x384xf32>
    %cst_9 = arith.constant dense<0.000000e+00> : vector<16x132xf32>
    %7 = tpu.matmul %0, %3, %cst_9 {dimension_numbers = #tpu.dot_dimension_numbers<[1], [0], [0], [1], [0, 0, 1, 1], [], []>} : vector<16x16xf32>, vector<16x132xf32>, vector<16x132xf32> -> vector<16x132xf32>
    %c1 = arith.constant 1 : index
    %c0_10 = arith.constant 0 : index
    %c0_11 = arith.constant 0 : index
    %8 = vector.load %arg4[%c1, %c0_10, %c0_11] : memref<3x132x384xf32, #tpu.memory_space<vmem>>, vector<1x132x384xf32>
    %9 = vector.shape_cast %8 : vector<1x132x384xf32> to vector<132x384xf32>
    %cst_12 = arith.constant dense<0.000000e+00> : vector<16x384xf32>
    %10 = tpu.matmul %7, %9, %cst_12 {dimension_numbers = #tpu.dot_dimension_numbers<[1], [0], [0], [1], [0, 0, 1, 1], [], []>} : vector<16x132xf32>, vector<132x384xf32>, vector<16x384xf32> -> vector<16x384xf32>
    %11 = arith.addf %6, %10 : vector<16x384xf32>
    %cst_13 = arith.constant dense<0.000000e+00> : vector<16x132xf32>
    %12 = tpu.matmul %0, %7, %cst_13 {dimension_numbers = #tpu.dot_dimension_numbers<[1], [0], [0], [1], [0, 0, 1, 1], [], []>} : vector<16x16xf32>, vector<16x132xf32>, vector<16x132xf32> -> vector<16x132xf32>
    %cst_14 = arith.constant 2.000000e+00 : f32
    %13 = vector.broadcast %cst_14 : f32 to vector<16x132xf32>
    %14 = arith.mulf %13, %12 : vector<16x132xf32>
    %15 = arith.subf %14, %3 : vector<16x132xf32>
    %c2 = arith.constant 2 : index
    %c0_15 = arith.constant 0 : index
    %c0_16 = arith.constant 0 : index
    %16 = vector.load %arg4[%c2, %c0_15, %c0_16] : memref<3x132x384xf32, #tpu.memory_space<vmem>>, vector<1x132x384xf32>
    %17 = vector.shape_cast %16 : vector<1x132x384xf32> to vector<132x384xf32>
    %cst_17 = arith.constant dense<0.000000e+00> : vector<16x384xf32>
    %18 = tpu.matmul %15, %17, %cst_17 {dimension_numbers = #tpu.dot_dimension_numbers<[1], [0], [0], [1], [0, 0, 1, 1], [], []>} : vector<16x132xf32>, vector<132x384xf32>, vector<16x384xf32> -> vector<16x384xf32>
    %19 = arith.addf %11, %18 : vector<16x384xf32>
    %c0_18 = arith.constant 0 : index
    %c0_19 = arith.constant 0 : index
    %20 = vector.load %arg5[%c0_18, %c0_19] : memref<1x384xf32, #tpu.memory_space<vmem>>, vector<1x384xf32>
    %21 = vector.broadcast %20 : vector<1x384xf32> to vector<16x384xf32>
    %22 = arith.addf %19, %21 : vector<16x384xf32>
    %23 = vector.extract_strided_slice %22 {offsets = [0, 0], sizes = [16, 128], strides = [1, 1]} : vector<16x384xf32> to vector<16x128xf32>
    %24 = arith.negf %23 : vector<16x128xf32>
    %25 = math.exp %24 : vector<16x128xf32>
    %cst_20 = arith.constant 1.000000e+00 : f32
    %26 = vector.broadcast %cst_20 : f32 to vector<16x128xf32>
    %27 = arith.addf %26, %25 : vector<16x128xf32>
    %28 = arith.divf %26, %27 : vector<16x128xf32>
    %29 = vector.extract_strided_slice %22 {offsets = [0, 128], sizes = [16, 128], strides = [1, 1]} : vector<16x384xf32> to vector<16x128xf32>
    %30 = arith.negf %29 : vector<16x128xf32>
    %31 = math.exp %30 : vector<16x128xf32>
    %cst_21 = arith.constant 1.000000e+00 : f32
    %32 = vector.broadcast %cst_21 : f32 to vector<16x128xf32>
    %33 = arith.addf %32, %31 : vector<16x128xf32>
    %34 = arith.divf %32, %33 : vector<16x128xf32>
    %35 = vector.extract_strided_slice %22 {offsets = [0, 256], sizes = [16, 128], strides = [1, 1]} : vector<16x384xf32> to vector<16x128xf32>
    %36 = arith.mulf %1, %34 : vector<16x128xf32>
    %c0_22 = arith.constant 0 : index
    %c0_23 = arith.constant 0 : index
    %c0_24 = arith.constant 0 : index
    %37 = vector.load %arg6[%c0_22, %c0_23, %c0_24] : memref<3x128x128xf32, #tpu.memory_space<vmem>>, vector<1x128x128xf32>
    %38 = vector.shape_cast %37 : vector<1x128x128xf32> to vector<128x128xf32>
    %cst_25 = arith.constant dense<0.000000e+00> : vector<16x128xf32>
    %39 = tpu.matmul %36, %38, %cst_25 {dimension_numbers = #tpu.dot_dimension_numbers<[1], [0], [0], [1], [0, 0, 1, 1], [], []>} : vector<16x128xf32>, vector<128x128xf32>, vector<16x128xf32> -> vector<16x128xf32>
    %cst_26 = arith.constant dense<0.000000e+00> : vector<16x128xf32>
    %40 = tpu.matmul %0, %36, %cst_26 {dimension_numbers = #tpu.dot_dimension_numbers<[1], [0], [0], [1], [0, 0, 1, 1], [], []>} : vector<16x16xf32>, vector<16x128xf32>, vector<16x128xf32> -> vector<16x128xf32>
    %c1_27 = arith.constant 1 : index
    %c0_28 = arith.constant 0 : index
    %c0_29 = arith.constant 0 : index
    %41 = vector.load %arg6[%c1_27, %c0_28, %c0_29] : memref<3x128x128xf32, #tpu.memory_space<vmem>>, vector<1x128x128xf32>
    %42 = vector.shape_cast %41 : vector<1x128x128xf32> to vector<128x128xf32>
    %cst_30 = arith.constant dense<0.000000e+00> : vector<16x128xf32>
    %43 = tpu.matmul %40, %42, %cst_30 {dimension_numbers = #tpu.dot_dimension_numbers<[1], [0], [0], [1], [0, 0, 1, 1], [], []>} : vector<16x128xf32>, vector<128x128xf32>, vector<16x128xf32> -> vector<16x128xf32>
    %44 = arith.addf %39, %43 : vector<16x128xf32>
    %cst_31 = arith.constant dense<0.000000e+00> : vector<16x128xf32>
    %45 = tpu.matmul %0, %40, %cst_31 {dimension_numbers = #tpu.dot_dimension_numbers<[1], [0], [0], [1], [0, 0, 1, 1], [], []>} : vector<16x16xf32>, vector<16x128xf32>, vector<16x128xf32> -> vector<16x128xf32>
    %cst_32 = arith.constant 2.000000e+00 : f32
    %46 = vector.broadcast %cst_32 : f32 to vector<16x128xf32>
    %47 = arith.mulf %46, %45 : vector<16x128xf32>
    %48 = arith.subf %47, %36 : vector<16x128xf32>
    %c2_33 = arith.constant 2 : index
    %c0_34 = arith.constant 0 : index
    %c0_35 = arith.constant 0 : index
    %49 = vector.load %arg6[%c2_33, %c0_34, %c0_35] : memref<3x128x128xf32, #tpu.memory_space<vmem>>, vector<1x128x128xf32>
    %50 = vector.shape_cast %49 : vector<1x128x128xf32> to vector<128x128xf32>
    %cst_36 = arith.constant dense<0.000000e+00> : vector<16x128xf32>
    %51 = tpu.matmul %48, %50, %cst_36 {dimension_numbers = #tpu.dot_dimension_numbers<[1], [0], [0], [1], [0, 0, 1, 1], [], []>} : vector<16x128xf32>, vector<128x128xf32>, vector<16x128xf32> -> vector<16x128xf32>
    %52 = arith.addf %44, %51 : vector<16x128xf32>
    %c0_37 = arith.constant 0 : index
    %c0_38 = arith.constant 0 : index
    %53 = vector.load %arg7[%c0_37, %c0_38] : memref<1x128xf32, #tpu.memory_space<vmem>>, vector<1x128xf32>
    %54 = vector.broadcast %53 : vector<1x128xf32> to vector<16x128xf32>
    %55 = arith.addf %52, %54 : vector<16x128xf32>
    %56 = arith.addf %35, %55 : vector<16x128xf32>
    %57 = math.tanh %56 : vector<16x128xf32>
    %58 = arith.mulf %28, %1 : vector<16x128xf32>
    %cst_39 = arith.constant 1.000000e+00 : f32
    %59 = vector.broadcast %cst_39 : f32 to vector<16x128xf32>
    %60 = arith.subf %59, %28 : vector<16x128xf32>
    %61 = arith.mulf %60, %57 : vector<16x128xf32>
    %62 = arith.addf %58, %61 : vector<16x128xf32>
    %cst_40 = arith.constant 0.000000e+00 : f32
    %63 = vector.broadcast %cst_40 : f32 to vector<16x128xf32>
    %64 = arith.maximumf %62, %63 : vector<16x128xf32>
    %c0_41 = arith.constant 0 : index
    %c0_42 = arith.constant 0 : index
    %65 = vector.load %arg8[%c0_41, %c0_42] : memref<128x128xf32, #tpu.memory_space<vmem>>, vector<128x128xf32>
    %cst_43 = arith.constant dense<0.000000e+00> : vector<16x128xf32>
    %66 = tpu.matmul %64, %65, %cst_43 {dimension_numbers = #tpu.dot_dimension_numbers<[1], [0], [0], [1], [0, 0, 1, 1], [], []>} : vector<16x128xf32>, vector<128x128xf32>, vector<16x128xf32> -> vector<16x128xf32>
    %c0_44 = arith.constant 0 : index
    %c0_45 = arith.constant 0 : index
    %67 = vector.load %arg9[%c0_44, %c0_45] : memref<1x128xf32, #tpu.memory_space<vmem>>, vector<1x128xf32>
    %68 = vector.broadcast %67 : vector<1x128xf32> to vector<16x128xf32>
    %69 = arith.addf %66, %68 : vector<16x128xf32>
    %c0_46 = arith.constant 0 : index
    %c0_47 = arith.constant 0 : index
    %c0_48 = arith.constant 0 : index
    %70 = vector.load %arg10[%c0_46, %c0_47, %c0_48] : memref<1x16x128xf32, #tpu.memory_space<vmem>>, vector<1x16x128xf32>
    %71 = vector.shape_cast %70 : vector<1x16x128xf32> to vector<16x128xf32>
    %72 = vector.shape_cast %69 : vector<16x128xf32> to vector<1x16x128xf32>
    tpu.vector_store %arg10[%c0_46, %c0_47, %c0_48], %72 {strides = array<i32>} : memref<1x16x128xf32, #tpu.memory_space<vmem>>, vector<1x16x128xf32>,
    return
  }
  func.func @transform_0(%arg0: i32) -> (i32, i32) {
    %c0_i32 = arith.constant 0 : i32
    %c0_i32_0 = arith.constant 0 : i32
    %c0_i32_1 = arith.constant 0 : i32
    return %c0_i32, %c0_i32_0 : i32, i32
  }
  func.func @transform_1(%arg0: i32) -> (i32, i32, i32) {
    %c0_i32 = arith.constant 0 : i32
    %c0_i32_0 = arith.constant 0 : i32
    %c0_i32_1 = arith.constant 0 : i32
    return %arg0, %c0_i32, %c0_i32_0 : i32, i32, i32
  }
  func.func @transform_2(%arg0: i32) -> (i32, i32) {
    %c0_i32 = arith.constant 0 : i32
    %c0_i32_0 = arith.constant 0 : i32
    %c0_i32_1 = arith.constant 0 : i32
    return %c0_i32, %c0_i32_0 : i32, i32
  }
  func.func @transform_3(%arg0: i32) -> (i32, i32, i32) {
    %c0_i32 = arith.constant 0 : i32
    %c0_i32_0 = arith.constant 0 : i32
    %c0_i32_1 = arith.constant 0 : i32
    %c0_i32_2 = arith.constant 0 : i32
    return %c0_i32, %c0_i32_0, %c0_i32_1 : i32, i32, i32
  }
  func.func @transform_4(%arg0: i32) -> (i32, i32) {
    %c0_i32 = arith.constant 0 : i32
    %c0_i32_0 = arith.constant 0 : i32
    %c0_i32_1 = arith.constant 0 : i32
    return %c0_i32, %c0_i32_0 : i32, i32
  }
  func.func @transform_5(%arg0: i32) -> (i32, i32, i32) {
    %c0_i32 = arith.constant 0 : i32
    %c0_i32_0 = arith.constant 0 : i32
    %c0_i32_1 = arith.constant 0 : i32
    %c0_i32_2 = arith.constant 0 : i32
    return %c0_i32, %c0_i32_0, %c0_i32_1 : i32, i32, i32
  }
  func.func @transform_6(%arg0: i32) -> (i32, i32) {
    %c0_i32 = arith.constant 0 : i32
    %c0_i32_0 = arith.constant 0 : i32
    %c0_i32_1 = arith.constant 0 : i32
    return %c0_i32, %c0_i32_0 : i32, i32
  }
  func.func @transform_7(%arg0: i32) -> (i32, i32) {
    %c0_i32 = arith.constant 0 : i32
    %c0_i32_0 = arith.constant 0 : i32
    %c0_i32_1 = arith.constant 0 : i32
    return %c0_i32, %c0_i32_0 : i32, i32
  }
  func.func @transform_8(%arg0: i32) -> (i32, i32) {
    %c0_i32 = arith.constant 0 : i32
    %c0_i32_0 = arith.constant 0 : i32
    %c0_i32_1 = arith.constant 0 : i32
    return %c0_i32, %c0_i32_0 : i32, i32
  }
  func.func @transform_9(%arg0: i32) -> (i32, i32, i32) {
    %c0_i32 = arith.constant 0 : i32
    %c0_i32_0 = arith.constant 0 : i32
    %c0_i32_1 = arith.constant 0 : i32
    return %arg0, %c0_i32, %c0_i32_0 : i32, i32, i32
  }
}

</mosaic_0001>

<bundles_post_ra>
// kernel: tpu_custom_call.1
= control target key start
LH: loop header
LB: loop body
LE: loop exit
PB: predicated region body
PF: predicated region fallthrough
CT: control target
= control target key end

     0   :  { %s3555_s0 = inlined_call_operand.hbm [shape: f32[16,16], index: 0, kind: input, shape index: {}]   ;;  %s3556_s1 = inlined_call_operand.hbm [shape: f32[8,16,132], index: 1, kind: input, shape index: {}]   ;;  %s3557_s2 = inlined_call_operand.hbm [shape: f32[16,128], index: 2, kind: input, shape index: {}]   ;;  %s3558_s3 = inlined_call_operand.hbm [shape: f32[3,132,384], index: 3, kind: input, shape index: {}]   ;;  %s3559_s4 = inlined_call_operand.vmem [shape: f32[1,384], index: 4, kind: input, shape index: {}]   ;;  %s3560_s5 = inlined_call_operand.hbm [shape: f32[3,128,128], index: 5, kind: input, shape index: {}]   ;;  %s3561_s6 = inlined_call_operand.vmem [shape: f32[1,128], index: 6, kind: input, shape index: {}]   ;;  %s3562_s7 = inlined_call_operand.hbm [shape: f32[128,128], index: 7, kind: input, shape index: {}]   ;;  %s3563_s8 = inlined_call_operand.vmem [shape: f32[1,128], index: 8, kind: input, shape index: {}]   ;;  %s3564_s9 = inlined_call_operand.hbm [shape: f32[8,16,128], index: 9, kind: output, shape index: {}]  }
   0x1   :  { %3574 = sst [smem:[#allocation22_spill]] %s3557_s2 }
   0x2   :  { %14 = vsyncpa [#allocation3], 0 }
   0x3   :  { %15 = vsyncpa [#allocation6], 0 }
   0x4   :  { %17 = vsyncpa [#allocation6 + $0x1], 0 }
   0x5   :  { %18 = vsyncpa [#allocation9], 0 }
   0x6   :  { %19 = vsyncpa [#allocation12], 0 }
   0x7   :  { %20 = vsyncpa [#allocation4], 0 }
   0x8   :  { %22 = vsyncpa [#allocation4 + $0x1], 0  ;;  %s3074_s30 = smov 0   ;;  %s3076_s10 = smov 0  }
   0x9   :  { %s3078_s11 = smov 0   ;;  %s3080_s12 = smov 0  }
   0xa LB: > { %3575 = sst [smem:[#allocation20_spill]] %s2993_s30  ;;  %s3095_s13 = sadd.s32 4294967295, %s3005_s12   ;;  %s3005_s12 = sphi %s3080_s12, %s3604_s12   ;;  %s3001_s11 = sphi %s3078_s11, %s3603_s11   ;;  %s2997_s10 = sphi %s3076_s10, %s3602_s10   ;;  %s2993_s30 = sphi %s3074_s30, %s3601_s30  }
   0xb   : > { %s2005_s14 = sadd.s32 4294967294, %s3005_s12   ;;  %p69_p0 = scmp.ne.s32.totalorder %s2997_s10, %s2993_s30 }
   0xc   : > { %p3565_p1 = scmp.eq.s32.totalorder %s3095_s13, 0  ;;  %p246_p3 = scmp.eq.s32.totalorder %s2005_s14, 7 }
   0xd   : > { %p2006_p5 = scmp.ge.s32.totalorder %s3005_s12, 1  ;;  %p253_p7 = scmp.lt.s32.totalorder %s3005_s12, 9 }
   0xe   : > { %p3104_p4 = por %p3565_p1, %p69_p0  ;;  %p3109_p6 = por %p246_p3, %p69_p0 }
   0xf   : > { %p3114_p8 = pnand %p2006_p5, %p253_p7  ;;  %s3007_s18 = smov [#allocation7]  }
  0x10   : > { %s3576_s15 = scalar_select %p3104_p4, 1, 0 }
  0x11   : > { %s3577_s16 = scalar_select %p3109_p6, 1, 0 }
  0x12   : > { %s3579_s17 = scalar_select %p3114_p8, 1, 0 }
  0x13   : > { %3578 = sst [smem:[#allocation21_spill]] %s3577_s16  ;;  %p2648_p9 = pneg %p3114_p8 }
  0x14   : > { %s278_s19 = sshll.u32 %s3007_s18, 4  ;;  %s3008_s21 = smov [#allocation8]   ;;  %s279_s19 = int_to_ptr.vmem [resolvable:$true] %s278_s19 }
  0x15   : > { %p3122_p10 = pnand %p2648_p9, %p3565_p1  ;;  %s291_s22 = sshll.u32 %s3008_s21, 4  ;;  %s3126_s22 = int_to_ptr.vmem [resolvable:$true] %s291_s22 }
  0x16   : > { %s3581_s2 = sld [smem:[#allocation22_spill]] }
  0x17   : > { %p3136_p12 = pneg %p3122_p10 }
  0x1c   : > { %s2753_s25 = scalar_lea.hbm %s3581_s2, 256 }
  0x1d   : > { %p2754_p11 = scmp.ne.s32.totalorder %s3581_s2, %s2753_s25  ;;  %p2760_p3 = scmp.lt.u32.totalorder %s2753_s25, %s3581_s2 }
  0x1f   : > { %p2756_p13 = pnand %p3136_p12, %p2754_p11 }
  0x21   : > { %p2757_p0 = pneg %p2756_p13 }
  0x23   : > { %p2762_p5 = pnand %p2760_p3, %p2757_p0 }
  0x25   : > { %2765 = shalt.err (!%p2762_p5)
}
  0x26   : > { %s2766_s18 = scalar_lea.vmem %s279_s19, 256  ;;  %p2774_p2 = scmp.lt.s32.totalorder %s279_s19, %s279_s19 }
  0x27   : > { %p2767_p7 = scmp.ne.s32.totalorder %s279_s19, %s2766_s18  ;;  %p2775_p6 = scmp.lt.s32.totalorder %s2766_s18, %s2766_s18 }
  0x29   : > { %p2769_p9 = pnand %p2767_p7, %p3136_p12  ;;  %p2776_p4 = por %p2775_p6, %p2774_p2 }
  0x2b   : > { %p2770_p1 = pneg %p2769_p9 }
  0x2d   : > { %p2777_p8 = pnand %p2776_p4, %p2770_p1 }
  0x2f   : > { %2780 = shalt.err (!%p2777_p8)
}
  0x30   : > { %s3570_s21 = smov 128   ;;  %s3572_s23 = smov 8  }
  0x31   : > { %2654 = dma.hbm_to_vmem [thread:$0]  (!%p3122_p10), %s3581_s2, 256, %s279_s19, [#allocation6], %s3570_s21, %s3570_s21, %s3572_s23  }
  0x32   : > { %s2781_s29 = scalar_lea.hbm %s3558_s3, 19584 }
  0x33   : > { %p2782_p1 = scmp.ne.s32.totalorder %s3558_s3, %s2781_s29  ;;  %p2788_p6 = scmp.lt.u32.totalorder %s2781_s29, %s3558_s3 }
  0x35   : > { %p2784_p2 = pnand %p2782_p1, %p3136_p12 }
  0x37   : > { %p2785_p4 = pneg %p2784_p2 }
  0x39   : > { %p2790_p8 = pnand %p2788_p6, %p2785_p4 }
  0x3b   : > { %2793 = shalt.err (!%p2790_p8)
}
  0x3c   : > { %s2794_s19 = scalar_lea.vmem %s3126_s22, 19584  ;;  %p2802_p3 = scmp.lt.s32.totalorder %s3126_s22, %s3126_s22 }
  0x3d   : > { %p2795_p11 = scmp.ne.s32.totalorder %s3126_s22, %s2794_s19  ;;  %p2803_p5 = scmp.lt.s32.totalorder %s2794_s19, %s2794_s19 }
  0x3f   : > { %p2797_p13 = pnand %p2795_p11, %p3136_p12  ;;  %p2804_p7 = por %p2803_p5, %p2802_p3 }
  0x41   : > { %p2798_p0 = pneg %p2797_p13 }
  0x43   : > { %p2805_p9 = pnand %p2804_p7, %p2798_p0 }
  0x45   : > { %2808 = shalt.err (!%p2805_p9)
}
  0x46   : > { %s3011_s24 = smov 384   ;;  %s3012_s30 = smov 24  }
  0x47   : > { %2657 = dma.hbm_to_vmem [thread:$0]  (!%p3122_p10), %s3558_s3, 19584, %s3126_s22, [#allocation9], %s3011_s24, %s3011_s24, %s3012_s30  }
  0x48   : > { %s3013_s26 = smov [#allocation2]   ;;  %s3014_s29 = smov [#allocation10]  }
  0x49   : > { %s265_s27 = sshll.u32 %s3013_s26, 4  ;;  %s307_s14 = sshll.u32 %s3014_s29, 4  ;;  %s266_s27 = int_to_ptr.vmem [resolvable:$true] %s265_s27  ;;  %s3178_s14 = int_to_ptr.vmem [resolvable:$true] %s307_s14 }
  0x4a   : > { %s2809_s21 = scalar_lea.hbm %s3555_s0, 256 }
  0x4b   : > { %p2810_p1 = scmp.ne.s32.totalorder %s3555_s0, %s2809_s21  ;;  %p2816_p6 = scmp.lt.u32.totalorder %s2809_s21, %s3555_s0 }
  0x4d   : > { %p2812_p2 = pnand %p2810_p1, %p3136_p12 }
  0x4f   : > { %p2813_p4 = pneg %p2812_p2 }
  0x51   : > { %p2818_p8 = pnand %p2816_p6, %p2813_p4 }
  0x53   : > { %2821 = shalt.err (!%p2818_p8)
}
  0x54   : > { %s2822_s24 = scalar_lea.vmem %s266_s27, 256  ;;  %p2830_p3 = scmp.lt.s32.totalorder %s266_s27, %s266_s27 }
  0x55   : > { %p2823_p11 = scmp.ne.s32.totalorder %s266_s27, %s2822_s24  ;;  %p2831_p5 = scmp.lt.s32.totalorder %s2822_s24, %s2822_s24 }
  0x57   : > { %p2825_p13 = pnand %p2823_p11, %p3136_p12  ;;  %p2832_p7 = por %p2831_p5, %p2830_p3 }
  0x59   : > { %p2826_p0 = pneg %p2825_p13 }
  0x5b   : > { %p2833_p9 = pnand %p2832_p7, %p2826_p0 }
  0x5d   : > { %2836 = shalt.err (!%p2833_p9)
}
  0x5e   : > { %s3583_s2 = smov 8   ;;  %s3584_s23 = smov 128  }
  0x5f   : > { %2651 = dma.hbm_to_vmem [thread:$0]  (!%p3122_p10), %s3555_s0, 256, %s266_s27, [#allocation3], %s3584_s23, %s3584_s23, %s3583_s2  }
  0x60   : > { %s2837_s29 = scalar_lea.hbm %s3560_s5, 6144 }
  0x61   : > { %p2838_p1 = scmp.ne.s32.totalorder %s3560_s5, %s2837_s29  ;;  %p2844_p6 = scmp.lt.u32.totalorder %s2837_s29, %s3560_s5 }
  0x63   : > { %p2840_p2 = pnand %p2838_p1, %p3136_p12 }
  0x65   : > { %p2841_p4 = pneg %p2840_p2 }
  0x67   : > { %p2846_p8 = pnand %p2844_p6, %p2841_p4 }
  0x69   : > { %2849 = shalt.err (!%p2846_p8)
}
  0x6a   : > { %s2850_s27 = scalar_lea.vmem %s3178_s14, 6144  ;;  %p2858_p3 = scmp.lt.s32.totalorder %s3178_s14, %s3178_s14 }
  0x6b   : > { %p2851_p11 = scmp.ne.s32.totalorder %s3178_s14, %s2850_s27  ;;  %p2859_p5 = scmp.lt.s32.totalorder %s2850_s27, %s2850_s27 }
  0x6d   : > { %p2853_p13 = pnand %p2851_p11, %p3136_p12  ;;  %p2860_p7 = por %p2859_p5, %p2858_p3 }
  0x6f   : > { %p2854_p0 = pneg %p2853_p13 }
  0x71   : > { %p2861_p9 = pnand %p2860_p7, %p2854_p0 }
  0x73   : > { %2864 = shalt.err (!%p2861_p9)
}
  0x74   : > { %2660 = dma.hbm_to_vmem [thread:$0]  (!%p3122_p10), %s3560_s5, 6144, %s3178_s14, [#allocation9], %s3584_s23, %s3584_s23, %s3583_s2  }
  0x75   : > { %s3015_s21 = smov [#allocation11]   ;;  %s3228_s26 = sadd.s32 1, %s3005_s12  }
  0x76   : > { %s323_s25 = sshll.u32 %s3015_s21, 4  ;;  %s2865_s19 = scalar_lea.hbm %s3562_s7, 2048  ;;  %s324_s25 = int_to_ptr.vmem [resolvable:$true] %s323_s25 }
  0x77   : > { %p2866_p1 = scmp.ne.s32.totalorder %s3562_s7, %s2865_s19  ;;  %p2872_p6 = scmp.lt.u32.totalorder %s2865_s19, %s3562_s7 }
  0x79   : > { %p2868_p2 = pnand %p2866_p1, %p3136_p12 }
  0x7b   : > { %p2869_p4 = pneg %p2868_p2 }
  0x7d   : > { %p2874_p8 = pnand %p2872_p6, %p2869_p4 }
  0x7f   : > { %2877 = shalt.err (!%p2874_p8)
}
  0x80   : > { %s2878_s14 = scalar_lea.vmem %s324_s25, 2048  ;;  %p2886_p3 = scmp.lt.s32.totalorder %s324_s25, %s324_s25 }
  0x81   : > { %p2879_p11 = scmp.ne.s32.totalorder %s324_s25, %s2878_s14  ;;  %p2887_p5 = scmp.lt.s32.totalorder %s2878_s14, %s2878_s14 }
  0x83   : > { %p2881_p13 = pnand %p2879_p11, %p3136_p12  ;;  %p2888_p7 = por %p2887_p5, %p2886_p3 }
  0x85   : > { %p2882_p0 = pneg %p2881_p13 }
  0x87   : > { %p2889_p9 = pnand %p2888_p7, %p2882_p0 }
  0x89   : > { %2892 = shalt.err (!%p2889_p9)
}
  0x8a   : > { %2663 = dma.hbm_to_vmem [thread:$0]  (!%p3122_p10), %s3562_s7, 2048, %s324_s25, [#allocation12], %s3584_s23, %s3584_s23, %s3583_s2  }
  0x8b   : > { %s53_s20 = ssub.s32 %s3005_s12, %s3228_s26  ;;  %s56_s28 = sadd.s32 1, %s3001_s11 }
  0x8c   : > { %p54_p12 = scmp.eq.s32.totalorder %s53_s20, 0  ;;  %p63_p1 = scmp.ne.s32.totalorder %s3001_s11, %s2997_s10 }
  0x8d   : > { %p64_p2 = scmp.eq.s32.totalorder %s3005_s12, 0  ;;  %p2677_p4 = scmp.lt.s32.totalorder %s3005_s12, 8 }
  0x8e   : > { %s3259_s29 = scalar_select %p54_p12, %s3001_s11, %s56_s28  }
  0x8f   : > { %p65_p6 = por %p64_p2, %p63_p1  ;;  %p3585_p8 = scmp.eq.s32.totalorder %s3095_s13, 7 }
  0x90   : > { %s340_s19 = sand.u32 1, %s3005_s12   ;;  %s342_s16 = sand.u32 1, %s3001_s11  }
  0x91   : > { %p3263_p11 = por %p3585_p8, %p63_p1  ;;  %s2013_s22 = sshll.u32 %s342_s16, 5 }
  0x92   : > { %s2064_s27 = sshll.u32 %s3005_s12, 9  ;;  %s344_s25 = scalar_lea.vmem [#allocation5], %s2013_s22 }
  0x93   : > { %s3273_s23 = scalar_lea.hbm %s3556_s1, %s2064_s27  ;;  %s351_s14 = sshll.u32 %s344_s25, 4  ;;  %s3275_s14 = int_to_ptr.vmem [resolvable:$true] %s351_s14 }
  0x94   : > { %p3277_p10 = pnand %p2677_p4, %p65_p6  ;;  %s3281_s21 = scalar_lea.sflag [#allocation6], %s340_s19 }
  0x95   : > { %s2893_s20 = scalar_lea.hbm %s3273_s23, 512  ;;  %s2898_s22 = scalar_lea.hbm %s3556_s1, 4096 }
  0x96   : > { %p2894_p13 = scmp.ne.s32.totalorder %s3273_s23, %s2893_s20  ;;  %p2895_p0 = pneg %p3277_p10 }
  0x97   : > { %p2899_p7 = scmp.lt.u32.totalorder %s3273_s23, %s3556_s1  ;;  %p2900_p9 = scmp.lt.u32.totalorder %s2898_s22, %s2893_s20 }
  0x98   : > { %p2896_p3 = pnand %p2895_p0, %p2894_p13  ;;  %p2902_p1 = scmp.lt.u32.totalorder %s2893_s20, %s3273_s23 }
  0x99   : > { %p2901_p12 = por %p2900_p9, %p2899_p7 }
  0x9a   : > { %p2897_p5 = pneg %p2896_p3 }
  0x9b   : > { %p2903_p2 = por %p2902_p1, %p2901_p12 }
  0x9d   : > { %p2904_p4 = pnand %p2903_p2, %p2897_p5 }
  0x9f   : > { %2907 = shalt.err (!%p2904_p4)
}
  0xa0   : > { %s2908_s19 = scalar_lea.vmem %s3275_s14, 512  ;;  %s3016_s2 = smov [#allocation5]  }
  0xa1   : > { %p2909_p6 = scmp.ne.s32.totalorder %s3275_s14, %s2908_s19  ;;  %s2913_s25 = sshll.u32 %s3016_s2, 4  ;;  %s2914_s25 = int_to_ptr.vmem [resolvable:$false] %s2913_s25 }
  0xa2   : > { %s2915_s28 = scalar_lea.vmem %s2914_s25, 1024  ;;  %p2916_p3 = scmp.lt.s32.totalorder %s3275_s14, %s2914_s25 }
  0xa3   : > { %p2911_p8 = pnand %p2909_p6, %p2895_p0  ;;  %p2917_p7 = scmp.lt.s32.totalorder %s2915_s28, %s2908_s19 }
  0xa5   : > { %p2912_p13 = pneg %p2911_p8  ;;  %p2918_p9 = por %p2917_p7, %p2916_p3 }
  0xa7   : > { %p2919_p12 = pnand %p2918_p9, %p2912_p13 }
  0xa9   : > { %2922 = shalt.err (!%p2919_p12)
}
  0xaa   : > { %s3017_s20 = smov 256   ;;  %s3018_s16 = smov 16  }
  0xab   : > { %2667 = dma.hbm_to_vmem [thread:$0]  (!%p3277_p10), %s3273_s23, 512, %s3275_s14, %s3281_s21, %s3017_s20, %s3017_s20, %s3018_s16  }
  0xac   : > { %p3588_p0 = scmp.ne.s32.totalorder %s3579_s17, 0 }
  0xad   : > { %p3589_p5 = scmp.eq.s32.totalorder (!%p3588_p0), %s3095_s13, 0 }
  0xae   : > { %363 = sbr.rel (%p3588_p0) target bundleno = 1834 (0x72a), region = 56 }
  0xb5   : > { %2968 = dma.done.wait (%p3589_p5), [#allocation3], 256   ;;  %p3590_p1 = pmov %p3589_p5 }
  0xb6   : > { %s369_s22 = sand.u32 1, %s3095_s13   ;;  %s3317_s27 = sand.u32 1, %s2997_s10  }
  0xb7   : > { %2970 = vsyncadd (%p3590_p1), [#allocation3], 4294967040  ;;  %s2018_s24 = sshll.u32 %s3317_s27, 5  ;;  %s370_s19 = scalar_lea.sflag [#allocation6], %s369_s22 }
  0xb8   : > { %s373_s30 = scalar_lea.vmem [#allocation5], %s2018_s24  ;;  %p3591_p10 = scmp.ne.s32.totalorder %s3576_s15, 0 }
  0xba   : > { %2972 = dma.done.wait (%p3591_p10), %s370_s19, 512  }
  0xbb   : > { %2974 = vsyncadd (%p3591_p10), %s370_s19, 4294966784  ;;  %p3592_p2 = pmov %p3590_p1 }
  0xbc   : > { %p3593_p4 = pmov %p3590_p1 }
  0xbd   : > { %2976 = dma.done.wait (%p3592_p2), [#allocation6], 256  }
  0xbe   : > { %2978 = vsyncadd (%p3593_p4), [#allocation6], 4294967040  ;;  %p3594_p6 = pmov %p3590_p1 }
  0xbf   : > { %p3595_p8 = pmov %p3590_p1 }
  0xc0   : > { %2980 = dma.done.wait (%p3594_p6), [#allocation9], 25728  }
  0xc1   : > { %2982 = vsyncadd (%p3595_p8), [#allocation9], 4294941568  ;;  %p3596_p13 = pmov %p3590_p1 }
  0xc2   : > { %p3597_p3 = pmov %p3590_p1 }
  0xc3   : > { %2984 = dma.done.wait (%p3596_p13), [#allocation12], 2048  }
  0xc4   : > { %2986 = vsyncadd (%p3597_p3), [#allocation12], 4294965248  ;;  %v3019_v0 = vmov 0.0   ;;  %v3020_v1 = vmov 0.0|0.0   ;;  %v3338_v2 = vld [vmem:[%s373_s30 + $0x8] sm:$0xff]  ;;  %v3340_v3 = vld [vmem:[%s373_s30 + $0x18] sm:$0xff] }
  0xc5   : > { %554 = vmatprep.mubr.f32.mxu1 %v3019_v0  ;;  %2336 = vmatprep.subr.bf16.mxu0 %v3020_v1  ;;  %v3342_v4 = vld [vmem:[%s373_s30] sm:$0xff]  ;;  %v2300_v5 = vpack.c.bf16 %v3340_v3, %v3338_v2  ;;  %v3346_v6 = vld [vmem:[%s373_s30 + $0x10] sm:$0xff]  ;;  %v572_v10 = vld [vmem:[#allocation8 + $0x1b8] sm:$0xff]  ;;  %vm483_vm0 = vcmask 130048   ;;  %vm626_vm1 = vcmask 1043456   ;;  %vm619_vm2 = vcmask 31744  }
  0xc6   : > { %v2302_v7 = vpack.c.bf16 %v3346_v6, %v3342_v4  ;;  %v3350_v8 = vld [vmem:[#allocation2] sm:$0xff]  ;;  %v568_v11 = vld [vmem:[#allocation8 + $0x198] sm:$0xff]  ;;  %v571_v13 = vld [vmem:[#allocation8 + $0x1b0] sm:$0xff]  ;;  %s2023_s21 = sshll.u32 %s3317_s27, 4  ;;  %s2065_s16 = sshll.u32 %s3095_s13, 8 }
  0xc7   : > { %v569_v9 = vld [vmem:[#allocation8 + $0x1a0] sm:$0xff]  ;;  %2301 = vmatprep.subr.bf16.mxu1 %v2300_v5  ;;  %v570_v14 = vld [vmem:[#allocation8 + $0x1a8] sm:$0xff]  ;;  %v2306_v16 = vpack.c.bf16 %v571_v13, %v568_v11  ;;  %v575_v18 = vld [vmem:[#allocation8 + $0x1d0] sm:$0xff]  ;;  %s423_s2 = scalar_lea.vmem [#allocation13], %s2023_s21  ;;  %s3512_s19 = scalar_lea.hbm %s3564_s9, %s2065_s16 }
  0xc8   : > { %v2304_v12 = vpack.c.bf16 %v572_v10, %v569_v9  ;;  %v573_v15 = vld [vmem:[#allocation8 + $0x1c0] sm:$0xff]  ;;  %2303 = vmatpush1.bf16.msra.mxu1 %v2302_v7  ;;  %v578_v19 = vld [vmem:[#allocation8 + $0x1e8] sm:$0xff]  ;;  %v576_v23 = vld [vmem:[#allocation8 + $0x1d8] sm:$0xff]  ;;  %s1882_s25 = sshll.u32 %s423_s2, 4  ;;  %s1869_s30 = scalar_lea.sflag [#allocation4], %s3317_s27  ;;  %s3507_s25 = int_to_ptr.vmem [resolvable:$true] %s1882_s25 }
  0xc9   : > { %v2337_v17 = vpack.c.bf16 %v573_v15, %v570_v14  ;;  %v574_v20 = vld [vmem:[#allocation8 + $0x1c8] sm:$0xff]  ;;  %v2308_v21 = vpack.c.bf16 %v578_v19, %v575_v18  ;;  %v577_v22 = vld [vmem:[#allocation8 + $0x1e0] sm:$0xff]  ;;  %v579_v24 = vld [vmem:[#allocation8 + $0x1f0] sm:$0xff]  ;;  %s2923_s15 = scalar_lea.vmem %s3507_s25, 256  ;;  %s3021_s13 = smov [#allocation13]  }
  0xca   : > { %2305 = vmatprep.subr.bf16.mxu1 %v2304_v12  ;;  %v2340_v25 = vpack.c.bf16 %v579_v24, %v576_v23  ;;  %v581_v26 = vld [vmem:[#allocation8 + $0x200] sm:$0xff]  ;;  %v584_v27 = vld [vmem:[#allocation8 + $0x218] sm:$0xff]  ;;  %v582_v28 = vld [vmem:[#allocation8 + $0x208] sm:$0xff]  ;;  %v2310_v31 = vpack.c.bf16 %v577_v22, %v574_v20  ;;  %p2924_p7 = scmp.ne.s32.totalorder %s3507_s25, %s2923_s15  ;;  %s2927_s17 = sshll.u32 %s3021_s13, 4  ;;  %s2928_s17 = int_to_ptr.vmem [resolvable:$false] %s2927_s17 }
  0xcb   : > { %2338 = vmatpush1.bf16.msra.mxu0 %v2337_v17  ;;  %2024 = vmatmul.mubr.msk.f32.vlgmr.msra.gmra.mrb[0].mxu1 %vm483_vm0, %v3350_v8  ;;  %v585_v29 = vld [vmem:[#allocation8 + $0x220] sm:$0xff]  ;;  %v3356_v30 = vld [vmem:[#allocation2 + $0x8] sm:$0xff]  ;;  %v2312_v32 = vpack.c.bf16 %v584_v27, %v581_v26  ;;  %v580_v33 = vld [vmem:[#allocation8 + $0x1f8] sm:$0xff]  ;;  %s2929_s23 = scalar_lea.vmem %s2928_s17, 512  ;;  %p2930_p0 = scmp.lt.s32.totalorder %s3507_s25, %s2928_s17 }
  0xcc   : > { %2339 = vmatprep.subr.bf16.mxu0 %v3020_v1  ;;  %560 = vmatprep.mubr.f32.mxu1 %v3019_v0  ;;  %v583_v34 = vld [vmem:[#allocation8 + $0x210] sm:$0xff]  ;;  %v2343_v35 = vpack.c.bf16 %v585_v29, %v582_v28  ;;  %v590_v37 = vld [vmem:[#allocation8 + $0x248] sm:$0xff]  ;;  %v588_v38 = vld [vmem:[#allocation8 + $0x238] sm:$0xff]  ;;  %p2925_p9 = pnand %p2924_p7, %p3263_p11  ;;  %p2931_p5 = scmp.lt.s32.totalorder %s2929_s23, %s2923_s15 }
  0xcd   : > { %2307 = vmatpush1.bf16.msra.mxu1 %v2306_v16  ;;  %v587_v36 = vld [vmem:[#allocation8 + $0x230] sm:$0xff]  ;;  %v2314_v40 = vpack.c.bf16 %v583_v34, %v580_v33  ;;  %v586_v42 = vld [vmem:[#allocation8 + $0x228] sm:$0xff]  ;;  %v589_v43 = vld [vmem:[#allocation8 + $0x240] sm:$0xff] }
  0xce   : > { %2309 = vmatprep.subr.bf16.mxu1 %v2308_v21  ;;  %v591_v39 = vld [vmem:[#allocation8 + $0x250] sm:$0xff]  ;;  %v2316_v41 = vpack.c.bf16 %v590_v37, %v587_v36  ;;  %v593_v45 = vld [vmem:[#allocation8 + $0x260] sm:$0xff]  ;;  %v596_v46 = vld [vmem:[#allocation8 + $0x278] sm:$0xff]  ;;  %v2318_v49 = vpack.c.bf16 %v589_v43, %v586_v42  ;;  %p2926_p12 = pneg %p2925_p9  ;;  %p2932_p1 = por %p2931_p5, %p2930_p0 }
  0xcf   : > { %2341 = vmatpush1.bf16.msra.mxu0 %v2340_v25  ;;  %2025 = vmatmul.mubr.msk.f32.gmra.mrb[2].mxu1 %vm483_vm0, %v3356_v30  ;;  %v2346_v44 = vpack.c.bf16 %v591_v39, %v588_v38  ;;  %v594_v47 = vld [vmem:[#allocation8 + $0x268] sm:$0xff]  ;;  %v597_v48 = vld [vmem:[#allocation8 + $0x280] sm:$0xff]  ;;  %v2320_v50 = vpack.c.bf16 %v596_v46, %v593_v45  ;;  %v592_v51 = vld [vmem:[#allocation8 + $0x258] sm:$0xff] }
  0xd0   : > { %2342 = vmatprep.subr.bf16.mxu0 %v3020_v1  ;;  %v595_v52 = vld [vmem:[#allocation8 + $0x270] sm:$0xff]  ;;  %v2349_v53 = vpack.c.bf16 %v597_v48, %v594_v47  ;;  %v602_v55 = vld [vmem:[#allocation8 + $0x2a8] sm:$0xff]  ;;  %v600_v56 = vld [vmem:[#allocation8 + $0x298] sm:$0xff]  ;;  %p2933_p10 = pnand %p2932_p1, %p2926_p12 }
  0xd1   : > { %2311 = vmatpush1.bf16.msra.mxu1 %v2310_v31  ;;  %v599_v54 = vld [vmem:[#allocation8 + $0x290] sm:$0xff]  ;;  %v2322_v58 = vpack.c.bf16 %v595_v52, %v592_v51  ;;  %v598_v60 = vld [vmem:[#allocation8 + $0x288] sm:$0xff]  ;;  %v601_v61 = vld [vmem:[#allocation8 + $0x2a0] sm:$0xff] }
  0xd2   : > { %2313 = vmatprep.subr.bf16.mxu1 %v2312_v32  ;;  %v603_v57 = vld [vmem:[#allocation8 + $0x2b0] sm:$0xff]  ;;  %v2324_v59 = vpack.c.bf16 %v602_v55, %v599_v54  ;;  %v605_v63 = vld [vmem:[#allocation8 + $0x2c0] sm:$0xff]  ;;  %v608_v5 = vld [vmem:[#allocation8 + $0x2d8] sm:$0xff]  ;;  %v2326_v10 = vpack.c.bf16 %v601_v61, %v598_v60 }
  0xd3   : > { %2344 = vmatpush1.bf16.msra.mxu0 %v2343_v35  ;;  %v2352_v62 = vpack.c.bf16 %v603_v57, %v600_v56  ;;  %v606_v7 = vld [vmem:[#allocation8 + $0x2c8] sm:$0xff]  ;;  %v609_v9 = vld [vmem:[#allocation8 + $0x2e0] sm:$0xff]  ;;  %v2328_v11 = vpack.c.bf16 %v608_v5, %v605_v63  ;;  %v604_v12 = vld [vmem:[#allocation8 + $0x2b8] sm:$0xff] }
  0xd4   : > { %2345 = vmatprep.subr.bf16.mxu0 %v3020_v1  ;;  %v607_v13 = vld [vmem:[#allocation8 + $0x2d0] sm:$0xff]  ;;  %v2355_v14 = vpack.c.bf16 %v609_v9, %v606_v7  ;;  %v614_v16 = vld [vmem:[#allocation8 + $0x308] sm:$0xff]  ;;  %v612_v17 = vld [vmem:[#allocation8 + $0x2f8] sm:$0xff] }
  0xd5   : > { %2315 = vmatpush1.bf16.msra.mxu1 %v2314_v40  ;;  %v611_v15 = vld [vmem:[#allocation8 + $0x2f0] sm:$0xff]  ;;  %v2330_v19 = vpack.c.bf16 %v607_v13, %v604_v12  ;;  %v610_v21 = vld [vmem:[#allocation8 + $0x2e8] sm:$0xff]  ;;  %v613_v22 = vld [vmem:[#allocation8 + $0x300] sm:$0xff] }
  0xd6   : > { %2317 = vmatprep.subr.bf16.mxu1 %v2316_v41  ;;  %v615_v18 = vld [vmem:[#allocation8 + $0x310] sm:$0xff]  ;;  %v2332_v20 = vpack.c.bf16 %v614_v16, %v611_v15  ;;  %v2334_v24 = vpack.c.bf16 %v613_v22, %v610_v21  ;;  %v617_v25 = vld [vmem:[#allocation8 + $0x320] sm:$0xf]  ;;  %v433_v26 = vld [vmem:[#allocation8 + $0x8] sm:$0xff] }
  0xd7   : > { %2347 = vmatpush1.bf16.msra.mxu0 %v2346_v44  ;;  %v2358_v23 = vpack.c.bf16 %v615_v18, %v612_v17  ;;  %v436_v27 = vld [vmem:[#allocation8 + $0x20] sm:$0xff]  ;;  %v616_v28 = vld [vmem:[#allocation8 + $0x318] sm:$0xf]  ;;  %v618_v29 = vld [vmem:[#allocation8 + $0x328] sm:$0xf] }
  0xd8   : > { %2348 = vmatprep.subr.bf16.mxu0 %v3020_v1  ;;  %v2360_v31 = vpack.c.bf16 %v436_v27, %v433_v26  ;;  %v432_v32 = vld [vmem:[#allocation8] sm:$0xff]  ;;  %v435_v33 = vld [vmem:[#allocation8 + $0x18] sm:$0xff]  ;;  %v434_v34 = vld [vmem:[#allocation8 + $0x10] sm:$0xff] }
  0xd9   : > { %2319 = vmatpush1.bf16.msra.mxu1 %v2318_v49  ;;  %v437_v35 = vld [vmem:[#allocation8 + $0x28] sm:$0xff]  ;;  %v439_v36 = vld [vmem:[#allocation8 + $0x38] sm:$0xff]  ;;  %v442_v37 = vld [vmem:[#allocation8 + $0x50] sm:$0xff]  ;;  %v2362_v39 = vpack.c.bf16 %v435_v33, %v432_v32 }
  0xda   : > { %2321 = vmatprep.subr.bf16.mxu1 %v2320_v50  ;;  %v2393_v40 = vpack.c.bf16 %v437_v35, %v434_v34  ;;  %v438_v41 = vld [vmem:[#allocation8 + $0x30] sm:$0xff]  ;;  %v2364_v43 = vpack.c.bf16 %v442_v37, %v439_v36  ;;  %v441_v44 = vld [vmem:[#allocation8 + $0x48] sm:$0xff]  ;;  %v440_v45 = vld [vmem:[#allocation8 + $0x40] sm:$0xff] }
  0xdb   : > { %2350 = vmatpush1.bf16.msra.mxu0 %v2349_v53  ;;  %v443_v46 = vld [vmem:[#allocation8 + $0x58] sm:$0xff]  ;;  %v445_v47 = vld [vmem:[#allocation8 + $0x68] sm:$0xff]  ;;  %v448_v48 = vld [vmem:[#allocation8 + $0x80] sm:$0xff]  ;;  %v2366_v50 = vpack.c.bf16 %v441_v44, %v438_v41 }
  0xdc   : > { %2351 = vmatprep.subr.bf16.mxu0 %v3020_v1  ;;  %v2396_v51 = vpack.c.bf16 %v443_v46, %v440_v45  ;;  %v444_v52 = vld [vmem:[#allocation8 + $0x60] sm:$0xff]  ;;  %v2368_v55 = vpack.c.bf16 %v448_v48, %v445_v47  ;;  %v447_v56 = vld [vmem:[#allocation8 + $0x78] sm:$0xff]  ;;  %v446_v57 = vld [vmem:[#allocation8 + $0x70] sm:$0xff] }
  0xdd   : > { %2323 = vmatpush1.bf16.msra.mxu1 %v2322_v58  ;;  %v449_v58 = vld [vmem:[#allocation8 + $0x88] sm:$0xff]  ;;  %v451_v60 = vld [vmem:[#allocation8 + $0x98] sm:$0xff]  ;;  %v454_v61 = vld [vmem:[#allocation8 + $0xb0] sm:$0xff] }
  0xde   : > { %2325 = vmatprep.subr.bf16.mxu1 %v2324_v59  ;;  %v2399_v63 = vpack.c.bf16 %v449_v58, %v446_v57  ;;  %v450_v5 = vld [vmem:[#allocation8 + $0x90] sm:$0xff]  ;;  %v2372_v7 = vpack.c.bf16 %v454_v61, %v451_v60  ;;  %v453_v9 = vld [vmem:[#allocation8 + $0xa8] sm:$0xff]  ;;  %v460_v13 = vld [vmem:[#allocation8 + $0xe0] sm:$0xff] }
  0xdf   : > { %2353 = vmatpush1.bf16.msra.mxu0 %v2352_v62  ;;  %v2370_v62 = vpack.c.bf16 %v447_v56, %v444_v52  ;;  %v457_v12 = vld [vmem:[#allocation8 + $0xc8] sm:$0xff]  ;;  %v456_v16 = vld [vmem:[#allocation8 + $0xc0] sm:$0xff]  ;;  %v459_v18 = vld [vmem:[#allocation8 + $0xd8] sm:$0xff] }
  0xe0   : > { %2354 = vmatprep.subr.bf16.mxu0 %v3020_v1  ;;  %v2376_v17 = vpack.c.bf16 %v460_v13, %v457_v12  ;;  %v463_v21 = vld [vmem:[#allocation8 + $0xf8] sm:$0xff]  ;;  %v466_v22 = vld [vmem:[#allocation8 + $0x110] sm:$0xff]  ;;  %v465_v27 = vld [vmem:[#allocation8 + $0x108] sm:$0xff] }
  0xe1   : > { %2327 = vmatpush1.bf16.msra.mxu1 %v2326_v10  ;;  %v452_v10 = vld [vmem:[#allocation8 + $0xa0] sm:$0xff]  ;;  %v2380_v26 = vpack.c.bf16 %v466_v22, %v463_v21  ;;  %v471_v37 = vld [vmem:[#allocation8 + $0x138] sm:$0xff]  ;;  %v474_v46 = vld [vmem:[#allocation8 + $0x150] sm:$0xff] }
  0xe2   : > { %2329 = vmatprep.subr.bf16.mxu1 %v2328_v11  ;;  %v455_v11 = vld [vmem:[#allocation8 + $0xb8] sm:$0xff]  ;;  %v472_v32 = vld [vmem:[#allocation8 + $0x140] sm:$0xff]  ;;  %v477_v48 = vld [vmem:[#allocation8 + $0x168] sm:$0xff] }
  0xe3   : > { %2356 = vmatpush1.bf16.msra.mxu0 %v2355_v14  ;;  %v2374_v14 = vpack.c.bf16 %v453_v9, %v450_v5  ;;  %v2402_v15 = vpack.c.bf16 %v455_v11, %v452_v10  ;;  %v468_v35 = vld [vmem:[#allocation8 + $0x120] sm:$0xff]  ;;  %v475_v41 = vld [vmem:[#allocation8 + $0x158] sm:$0xff]  ;;  %v2390_v52 = vpack.c.bf16 %v477_v48, %v474_v46  ;;  %v481_v56 = vld [vmem:[#allocation8 + $0x188] sm:$0xf] }
  0xe4   : > { %2357 = vmatprep.subr.bf16.mxu0 %v3020_v1  ;;  %v2386_v44 = vpack.c.bf16 %v471_v37, %v468_v35  ;;  %v480_v57 = vld [vmem:[#allocation8 + $0x180] sm:$0xf]  ;;  %v482_v58 = vld [vmem:[#allocation8 + $0x190] sm:$0xf]  ;;  %v1046_v60 = vld [vmem:[#allocation8 + $0x358] sm:$0xff] }
  0xe5   : > { %2331 = vmatpush1.bf16.msra.mxu1 %v2330_v19  ;;  %v458_v19 = vld [vmem:[#allocation8 + $0xd0] sm:$0xff]  ;;  %v1051_v5 = vld [vmem:[#allocation8 + $0x380] sm:$0xff]  ;;  %v1050_v10 = vld [vmem:[#allocation8 + $0x378] sm:$0xff] }
  0xe6   : > { %2333 = vmatprep.subr.bf16.mxu1 %v2332_v20  ;;  %v461_v20 = vld [vmem:[#allocation8 + $0xe8] sm:$0xff]  ;;  %v1049_v11 = vld [vmem:[#allocation8 + $0x370] sm:$0xff]  ;;  %v1058_v21 = vld [vmem:[#allocation8 + $0x3b8] sm:$0xff] }
  0xe7   : > { %2359 = vmatpush1.bf16.msra.mxu0 %v2358_v23  ;;  %v2378_v23 = vpack.c.bf16 %v459_v18, %v456_v16  ;;  %v1052_v12 = vld [vmem:[#allocation8 + $0x388] sm:$0xff]  ;;  %v1057_v16 = vld [vmem:[#allocation8 + $0x3b0] sm:$0xff]  ;;  %v1075_v46 = vld [vmem:[#allocation8 + $0x440] sm:$0xff] }
  0xe8   : > { %745 = vmatprep.subr.mxu0 %v3019_v0  ;;  %v1060_v22 = vld [vmem:[#allocation8 + $0x3c8] sm:$0xff]  ;;  %v1071_v48 = vld [vmem:[#allocation8 + $0x420] sm:$0xff] }
  0xe9   : > { %2335 = vmatpush1.bf16.msra.mxu1 %v2334_v24  ;;  %v2405_v24 = vpack.c.bf16 %v461_v20, %v458_v19  ;;  %v1056_v19 = vld [vmem:[#allocation8 + $0x3a8] sm:$0xff]  ;;  %v1055_v20 = vld [vmem:[#allocation8 + $0x3a0] sm:$0xff] }
  0xea   : > { %2026 = vmatprep.subr.msk.mxu1 %vm626_vm1, %v617_v25  ;;  %v462_v25 = vld [vmem:[#allocation8 + $0xf0] sm:$0xff] }
  0xeb   : > { %2030 = vmatpush1.msk.msra.mxu0 %vm626_vm1, %v618_v29  ;;  %v467_v29 = vld [vmem:[#allocation8 + $0x118] sm:$0xff]  ;;  %v2382_v33 = vpack.c.bf16 %v465_v27, %v462_v25  ;;  %v2459_v25 = vpack.c.bf16 %v1058_v21, %v1055_v20 }
  0xec   : > { %2392 = vmatprep.subr.bf16.mxu0 %v3020_v1 }
  0xed   : > { %2027 = vmatpush1.msk.msra.mxu1 %vm626_vm1, %v616_v28  ;;  %v464_v28 = vld [vmem:[#allocation8 + $0x100] sm:$0xff] }
  0xee   : > { %2361 = vmatprep.subr.bf16.mxu1 %v2360_v31  ;;  %v469_v31 = vld [vmem:[#allocation8 + $0x128] sm:$0xff]  ;;  %v2408_v34 = vpack.c.bf16 %v467_v29, %v464_v28  ;;  %v1062_v28 = vld [vmem:[#allocation8 + $0x3d8] sm:$0xff]  ;;  %v1061_v29 = vld [vmem:[#allocation8 + $0x3d0] sm:$0xff] }
  0xef   : > { %v2384_v36 = vpack.c.bf16 %v472_v32, %v469_v31  ;;  %v1064_v31 = vld [vmem:[#allocation8 + $0x3e8] sm:$0xff]  ;;  %v1066_v32 = vld [vmem:[#allocation8 + $0x3f8] sm:$0xff] }
  0xf0   : > { %v2462_v35 = vpack.c.bf16 %v1064_v31, %v1061_v29 }
 0x19e   : > { %v3371_v38 = vpop.f32.mrb[0].mxu1 }
 0x19f   : > { %v3373_v42 = vpop.f32.mrb[1].mxu1 }
 0x1a0   : > { %2028 = vmatprep.mubr.msk.f32.mxu1 %vm619_vm2, %v3373_v42  ;;  %2031 = vmatprep.mubr.msk.f32.mxu0 %vm619_vm2, %v3373_v42 }
 0x1a1   : > { %701 = vmatmul.mubr.f32.vlgmr.msra.gmra.mrb[4].mxu1 %v3371_v38  ;;  %778 = vmatmul.mubr.f32.vlgmr.msra.gmra.mrb[0].mxu0 %v3371_v38 }
 0x1a2   : > { %2363 = vmatpush1.bf16.msra.mxu1 %v2362_v39  ;;  %2394 = vmatpush1.bf16.msra.mxu0 %v2393_v40  ;;  %v3381_v49 = vpop.f32.mrb[2].mxu1  ;;  %v470_v39 = vld [vmem:[#allocation8 + $0x130] sm:$0xff]  ;;  %v473_v40 = vld [vmem:[#allocation8 + $0x148] sm:$0xff] }
 0x1a3   : > { %v2418_v53 = vpack.c.bf16 %v3381_v49, %v3371_v38  ;;  %v3385_v54 = vpop.f32.mrb[3].mxu1  ;;  %2365 = vmatprep.subr.bf16.mxu1 %v2364_v43  ;;  %2395 = vmatprep.subr.bf16.mxu0 %v3020_v1  ;;  %v478_v43 = vld [vmem:[#allocation8 + $0x170] sm:$0xff]  ;;  %v2411_v45 = vpack.c.bf16 %v473_v40, %v470_v39  ;;  %v1042_v38 = vld [vmem:[#allocation8 + $0x338] sm:$0xff]  ;;  %v1068_v39 = vld [vmem:[#allocation8 + $0x408] sm:$0xff] }
 0x1a4   : > { %v2416_v59 = vpack.c.bf16 %v3385_v54, %v3373_v42  ;;  %2032 = vmatprep.mubr.msk.f32.mxu0 %vm619_vm2, %v3385_v54  ;;  %2029 = vmatprep.mubr.msk.f32.mxu1 %vm619_vm2, %v3385_v54  ;;  %v2388_v47 = vpack.c.bf16 %v478_v43, %v475_v41  ;;  %v1045_v42 = vld [vmem:[#allocation8 + $0x350] sm:$0xff]  ;;  %v1044_v54 = vld [vmem:[#allocation8 + $0x348] sm:$0xff]  ;;  %v1067_v40 = vld [vmem:[#allocation8 + $0x400] sm:$0xff] }
 0x1a5   : > { %783 = vmatmul.mubr.f32.gmra.mrb[2].mxu0 %v3381_v49  ;;  %707 = vmatmul.mubr.f32.gmra.mrb[6].mxu1 %v3381_v49  ;;  %v1041_v49 = vld [vmem:[#allocation8 + $0x330] sm:$0xff]  ;;  %v1070_v41 = vld [vmem:[#allocation8 + $0x418] sm:$0xff] }
 0x1a6   : > { %2367 = vmatpush1.bf16.msra.mxu1 %v2366_v50  ;;  %2397 = vmatpush1.bf16.msra.mxu0 %v2396_v51  ;;  %v476_v50 = vld [vmem:[#allocation8 + $0x160] sm:$0xff]  ;;  %v479_v51 = vld [vmem:[#allocation8 + $0x178] sm:$0xff]  ;;  %v2422_v61 = vpack.c.bf16 %v1044_v54, %v1041_v49  ;;  %v1080_v49 = vld [vmem:[#allocation8 + $0x468] sm:$0xff] }
 0x1a7   : > { %2369 = vmatprep.subr.bf16.mxu1 %v2368_v55  ;;  %2398 = vmatprep.subr.bf16.mxu0 %v3020_v1  ;;  %v2414_v55 = vpack.c.bf16 %v479_v51, %v476_v50  ;;  %v1074_v50 = vld [vmem:[#allocation8 + $0x438] sm:$0xff]  ;;  %v1073_v51 = vld [vmem:[#allocation8 + $0x430] sm:$0xff] }
 0x1a8   : > { %2035 = vmatprep.mubr.msk.f32.mxu1 %vm619_vm2, %v3338_v2  ;;  %2038 = vmatprep.mubr.msk.f32.mxu0 %vm619_vm2, %v3338_v2 }
 0x1aa   : > { %2371 = vmatpush1.bf16.msra.mxu1 %v2370_v62  ;;  %2400 = vmatpush1.bf16.msra.mxu0 %v2399_v63  ;;  %v1048_v63 = vld [vmem:[#allocation8 + $0x368] sm:$0xff] }
 0x1ab   : > { %2373 = vmatprep.subr.bf16.mxu1 %v2372_v7  ;;  %2401 = vmatprep.subr.bf16.mxu0 %v3020_v1  ;;  %v1047_v7 = vld [vmem:[#allocation8 + $0x360] sm:$0xff]  ;;  %v2424_v9 = vpack.c.bf16 %v1051_v5, %v1048_v63 }
 0x1ac   : > { %v2426_v13 = vpack.c.bf16 %v1050_v10, %v1047_v7  ;;  %v1083_v5 = vld [vmem:[#allocation8 + $0x480] sm:$0xff]  ;;  %v1086_v7 = vld [vmem:[#allocation8 + $0x498] sm:$0xff] }
 0x1ad   : > { %v2450_v10 = vpack.c.bf16 %v1086_v7, %v1083_v5 }
 0x1ae   : > { %2375 = vmatpush1.bf16.msra.mxu1 %v2374_v14  ;;  %2403 = vmatpush1.bf16.msra.mxu0 %v2402_v15  ;;  %v2456_v14 = vpack.c.bf16 %v1052_v12, %v1049_v11  ;;  %v1054_v15 = vld [vmem:[#allocation8 + $0x398] sm:$0xff]  ;;  %v1088_v11 = vld [vmem:[#allocation8 + $0x4a8] sm:$0xff] }
 0x1af   : > { %2377 = vmatprep.subr.bf16.mxu1 %v2376_v17  ;;  %2404 = vmatprep.subr.bf16.mxu0 %v3020_v1  ;;  %v1053_v17 = vld [vmem:[#allocation8 + $0x390] sm:$0xff]  ;;  %v2428_v18 = vpack.c.bf16 %v1057_v16, %v1054_v15  ;;  %v1091_v15 = vld [vmem:[#allocation8 + $0x4c0] sm:$0xf] }
 0x1b2   : > { %2379 = vmatpush1.bf16.msra.mxu1 %v2378_v23  ;;  %2406 = vmatpush1.bf16.msra.mxu0 %v2405_v24  ;;  %v1063_v23 = vld [vmem:[#allocation8 + $0x3e0] sm:$0xff]  ;;  %v2430_v24 = vpack.c.bf16 %v1056_v19, %v1053_v17 }
 0x1b3   : > { %2381 = vmatprep.subr.bf16.mxu1 %v2380_v26  ;;  %2407 = vmatprep.subr.bf16.mxu0 %v3020_v1  ;;  %v1059_v26 = vld [vmem:[#allocation8 + $0x3c0] sm:$0xff]  ;;  %v2432_v27 = vpack.c.bf16 %v1063_v23, %v1060_v22 }
 0x1b6   : > { %2383 = vmatpush1.bf16.msra.mxu1 %v2382_v33  ;;  %2409 = vmatpush1.bf16.msra.mxu0 %v2408_v34  ;;  %v1069_v33 = vld [vmem:[#allocation8 + $0x410] sm:$0xff]  ;;  %v2434_v34 = vpack.c.bf16 %v1062_v28, %v1059_v26 }
 0x1b7   : > { %2385 = vmatprep.subr.bf16.mxu1 %v2384_v36  ;;  %2410 = vmatprep.subr.bf16.mxu0 %v3020_v1  ;;  %v1065_v36 = vld [vmem:[#allocation8 + $0x3f0] sm:$0xff]  ;;  %v2436_v37 = vpack.c.bf16 %v1069_v33, %v1066_v32 }
 0x1b8   : > { %v2438_v43 = vpack.c.bf16 %v1068_v39, %v1065_v36  ;;  %v1265_v39 = vld [vmem:[%s3559_s4] sm:$0x7] }
 0x1ba   : > { %2387 = vmatpush1.bf16.msra.mxu1 %v2386_v44  ;;  %2412 = vmatpush1.bf16.msra.mxu0 %v2411_v45  ;;  %v2465_v44 = vpack.c.bf16 %v1070_v41, %v1067_v40  ;;  %v1072_v45 = vld [vmem:[#allocation8 + $0x428] sm:$0xff] }
 0x1bb   : > { %2389 = vmatprep.subr.bf16.mxu1 %v2388_v47  ;;  %2413 = vmatprep.subr.bf16.mxu0 %v3020_v1  ;;  %v2440_v47 = vpack.c.bf16 %v1075_v46, %v1072_v45  ;;  %v1316_v45 = vld [vmem:[#allocation10 + $0x10] sm:$0xff]  ;;  %v1317_v46 = vld [vmem:[#allocation10 + $0x18] sm:$0xff] }
 0x1be   : > { %2391 = vmatpush1.bf16.msra.mxu1 %v2390_v52  ;;  %2415 = vmatpush1.bf16.msra.mxu0 %v2414_v55  ;;  %v2442_v52 = vpack.c.bf16 %v1074_v50, %v1071_v48  ;;  %v1076_v55 = vld [vmem:[#allocation8 + $0x448] sm:$0xff]  ;;  %v1319_v48 = vld [vmem:[#allocation10 + $0x28] sm:$0xff] }
 0x1bf   : > { %2033 = vmatprep.subr.msk.mxu1 %vm626_vm1, %v481_v56  ;;  %912 = vmatprep.subr.mxu0 %v3019_v0  ;;  %v2468_v56 = vpack.c.bf16 %v1076_v55, %v1073_v51  ;;  %v1320_v51 = vld [vmem:[#allocation10 + $0x30] sm:$0xff] }
 0x1c2   : > { %2034 = vmatpush1.msk.msra.mxu1 %vm626_vm1, %v480_v57  ;;  %2037 = vmatpush1.msk.msra.mxu0 %vm626_vm1, %v482_v58  ;;  %v1078_v57 = vld [vmem:[#allocation8 + $0x458] sm:$0xff]  ;;  %v1081_v58 = vld [vmem:[#allocation8 + $0x470] sm:$0xff] }
 0x1c3   : > { %868 = vmatmul.mubr.f32.vlgmr.msra.gmra.mrb[4].mxu1 %v3342_v4  ;;  %945 = vmatmul.mubr.f32.vlgmr.msra.gmra.mrb[4].mxu0 %v3342_v4 }
 0x1c4   : > { %2417 = vmatprep.subr.bf16.mxu1 %v2416_v59  ;;  %2036 = vmatprep.mubr.msk.f32.mxu1 %vm619_vm2, %v3340_v3  ;;  %v1043_v59 = vld [vmem:[#allocation8 + $0x340] sm:$0xff] }
 0x1c5   : > { %2419 = vmatpush1.bf16.msra.mxu1 %v2418_v53  ;;  %2039 = vmatprep.mubr.msk.f32.mxu0 %vm619_vm2, %v3340_v3  ;;  %v2420_v53 = vpack.c.bf16 %v1045_v42, %v1042_v38  ;;  %v2453_v62 = vpack.c.bf16 %v1046_v60, %v1043_v59  ;;  %v2444_v38 = vpack.c.bf16 %v1081_v58, %v1078_v57  ;;  %v1077_v42 = vld [vmem:[#allocation8 + $0x450] sm:$0xff]  ;;  %v1082_v59 = vld [vmem:[#allocation8 + $0x478] sm:$0xff] }
 0x1c6   : > { %2452 = vmatprep.subr.bf16.mxu0 %v3020_v1  ;;  %v2446_v54 = vpack.c.bf16 %v1080_v49, %v1077_v42  ;;  %v1323_v57 = vld [vmem:[#allocation10 + $0x48] sm:$0xff]  ;;  %v1325_v42 = vld [vmem:[#allocation10 + $0x58] sm:$0xff] }
 0x1c7   : > { %874 = vmatmul.mubr.f32.gmra.mrb[6].mxu1 %v3346_v6  ;;  %950 = vmatmul.mubr.f32.gmra.mrb[6].mxu0 %v3346_v6 }
 0x1c8   : > { %1019 = vmatprep.mubr.f32.mxu1 %v3019_v0  ;;  %2421 = vmatprep.subr.bf16.mxu1 %v2420_v53  ;;  %v1079_v53 = vld [vmem:[#allocation8 + $0x460] sm:$0xff] }
 0x1c9   : > { %2454 = vmatpush1.bf16.msra.mxu0 %v2453_v62  ;;  %v2471_v60 = vpack.c.bf16 %v1082_v59, %v1079_v53  ;;  %v1087_v62 = vld [vmem:[#allocation8 + $0x4a0] sm:$0xff]  ;;  %v1326_v53 = vld [vmem:[#allocation10 + $0x60] sm:$0xff] }
 0x1ca   : > { %2455 = vmatprep.subr.bf16.mxu0 %v3020_v1 }
 0x1cb   : > { %2040 = vmatmul.mubr.msk.f32.vlgmr.msra.gmra.mrb[8].mxu1 %vm483_vm0, %v3350_v8 }
 0x1cc   : > { %1025 = vmatprep.mubr.f32.mxu1 %v3019_v0  ;;  %2423 = vmatpush1.bf16.msra.mxu1 %v2422_v61  ;;  %v1084_v61 = vld [vmem:[#allocation8 + $0x488] sm:$0xff] }
 0x1cd   : > { %2425 = vmatprep.subr.bf16.mxu1 %v2424_v9  ;;  %2457 = vmatpush1.bf16.msra.mxu0 %v2456_v14  ;;  %v2448_v63 = vpack.c.bf16 %v1087_v62, %v1084_v61  ;;  %v1085_v9 = vld [vmem:[#allocation8 + $0x490] sm:$0xff]  ;;  %v1329_v61 = vld [vmem:[#allocation10 + $0x78] sm:$0xff] }
 0x1ce   : > { %2458 = vmatprep.subr.bf16.mxu0 %v3020_v1  ;;  %v2474_v12 = vpack.c.bf16 %v1088_v11, %v1085_v9  ;;  %v1089_v14 = vld [vmem:[#allocation8 + $0x4b0] sm:$0xf] }
 0x1cf   : > { %2041 = vmatmul.mubr.msk.f32.gmra.mrb[10].mxu1 %vm483_vm0, %v3356_v30 }
 0x1d0   : > { %2427 = vmatpush1.bf16.msra.mxu1 %v2426_v13  ;;  %v1090_v13 = vld [vmem:[#allocation8 + $0x4b8] sm:$0xf] }
 0x1d1   : > { %2429 = vmatprep.subr.bf16.mxu1 %v2428_v18  ;;  %2460 = vmatpush1.bf16.msra.mxu0 %v2459_v25 }
 0x1d2   : > { %2461 = vmatprep.subr.bf16.mxu0 %v3020_v1 }
 0x1d4   : > { %2431 = vmatpush1.bf16.msra.mxu1 %v2430_v24 }
 0x1d5   : > { %2433 = vmatprep.subr.bf16.mxu1 %v2432_v27  ;;  %2463 = vmatpush1.bf16.msra.mxu0 %v2462_v35 }
 0x1d6   : > { %2464 = vmatprep.subr.bf16.mxu0 %v3020_v1 }
 0x1d8   : > { %2435 = vmatpush1.bf16.msra.mxu1 %v2434_v34 }
 0x1d9   : > { %2437 = vmatprep.subr.bf16.mxu1 %v2436_v37  ;;  %2466 = vmatpush1.bf16.msra.mxu0 %v2465_v44 }
 0x1da   : > { %2467 = vmatprep.subr.bf16.mxu0 %v3020_v1 }
 0x1dc   : > { %2439 = vmatpush1.bf16.msra.mxu1 %v2438_v43  ;;  %v1315_v43 = vld [vmem:[#allocation10 + $0x8] sm:$0xff] }
 0x1dd   : > { %2441 = vmatprep.subr.bf16.mxu1 %v2440_v47  ;;  %2469 = vmatpush1.bf16.msra.mxu0 %v2468_v56  ;;  %v2516_v47 = vpack.c.bf16 %v1317_v46, %v1316_v45  ;;  %v1322_v56 = vld [vmem:[#allocation10 + $0x40] sm:$0xff] }
 0x1de   : > { %2470 = vmatprep.subr.bf16.mxu0 %v3020_v1  ;;  %v2528_v58 = vpack.c.bf16 %v1323_v57, %v1322_v56  ;;  %v1413_v56 = vld [vmem:[#allocation10 + $0xb8] sm:$0xff] }
 0x1e0   : > { %2443 = vmatpush1.bf16.msra.mxu1 %v2442_v52  ;;  %v1321_v52 = vld [vmem:[#allocation10 + $0x38] sm:$0xff] }
 0x1e1   : > { %2445 = vmatprep.subr.bf16.mxu1 %v2444_v38  ;;  %2472 = vmatpush1.bf16.msra.mxu0 %v2471_v60  ;;  %v2524_v55 = vpack.c.bf16 %v1321_v52, %v1320_v51  ;;  %v1324_v38 = vld [vmem:[#allocation10 + $0x50] sm:$0xff]  ;;  %v1411_v51 = vld [vmem:[#allocation10 + $0xa8] sm:$0xff] }
 0x1e2   : > { %2473 = vmatprep.subr.bf16.mxu0 %v3020_v1  ;;  %v2532_v49 = vpack.c.bf16 %v1325_v42, %v1324_v38  ;;  %v1328_v60 = vld [vmem:[#allocation10 + $0x70] sm:$0xff]  ;;  %v1415_v38 = vld [vmem:[#allocation10 + $0xc8] sm:$0xff] }
 0x1e3   : > { %v2540_v62 = vpack.c.bf16 %v1329_v61, %v1328_v60  ;;  %v1420_v61 = vld [vmem:[#allocation10 + $0xf0] sm:$0xff] }
 0x1e4   : > { %2447 = vmatpush1.bf16.msra.mxu1 %v2446_v54  ;;  %v1327_v54 = vld [vmem:[#allocation10 + $0x68] sm:$0xff] }
 0x1e5   : > { %2449 = vmatprep.subr.bf16.mxu1 %v2448_v63  ;;  %2475 = vmatpush1.bf16.msra.mxu0 %v2474_v12  ;;  %v2536_v59 = vpack.c.bf16 %v1327_v54, %v1326_v53  ;;  %v1417_v53 = vld [vmem:[#allocation10 + $0xd8] sm:$0xff] }
 0x1e6   : > { %1216 = vmatprep.subr.mxu0 %v3019_v0 }
 0x1e8   : > { %2451 = vmatpush1.bf16.msra.mxu1 %v2450_v10 }
 0x1e9   : > { %2042 = vmatprep.subr.msk.mxu1 %vm626_vm1, %v1090_v13  ;;  %2046 = vmatpush1.msk.msra.mxu0 %vm626_vm1, %v1091_v15 }
 0x1ec   : > { %2043 = vmatpush1.msk.msra.mxu1 %vm626_vm1, %v1089_v14 }
 0x274   : > { %v779_v16 = vpop.f32.mrb[0].mxu0 }
 0x275   : > { %v781_v17 = vpop.f32.mrb[1].mxu0 }
 0x278   : > { %v784_v1 = vpop.f32.mrb[2].mxu0 }
 0x279   : > { %v786_v18 = vpop.f32.mrb[3].mxu0 }
 0x296   : > { %v946_v19 = vpop.f32.mrb[4].mxu0 }
 0x297   : > { %v3442_v20 = vadd.f32 %v946_v19, %v779_v16  ;;  %v948_v21 = vpop.f32.mrb[5].mxu0 }
 0x29a   : > { %v951_v22 = vpop.f32.mrb[6].mxu0 }
 0x29b   : > { %v3444_v23 = vadd.f32 %v951_v22, %v784_v1  ;;  %v953_v0 = vpop.f32.mrb[7].mxu0 }
 0x29e   : > { %v1021_v24 = vpop.f32.mrb[8].mxu1 }
 0x29f   : > { %v1032_v25 = vmul.f32 2.0, %v1021_v24  ;;  %v1023_v26 = vpop.f32.mrb[9].mxu1 }
 0x2a0   : > { %v1033_v27 = vmul.f32 2.0, %v1023_v26 }
 0x2a1   : > { %v1036_v31 = vsub.f32 %v1032_v25, %v3342_v4 }
 0x2a2   : > { %v1037_v28 = vsub.f32 %v1033_v27, %v3338_v2  ;;  %v1027_v29 = vpop.f32.mrb[10].mxu1  ;;  %v1267_v2 = vlaneseq }
 0x2a3   : > { %v1034_v32 = vmul.f32 2.0, %v1027_v29  ;;  %v1029_v33 = vpop.f32.mrb[11].mxu1 }
 0x2a4   : > { %v1035_v34 = vmul.f32 2.0, %v1029_v33  ;;  %2044 = vmatprep.mubr.msk.f32.mxu1 %vm619_vm2, %v1037_v28  ;;  %2047 = vmatprep.mubr.msk.f32.mxu0 %vm619_vm2, %v1037_v28  ;;  %v1268_v4 = vshrl.u32 %v1267_v2, 7 }
 0x2a5   : > { %1172 = vmatmul.mubr.f32.vlgmr.msra.gmra.mrb[4].mxu1 %v1036_v31  ;;  %1249 = vmatmul.mubr.f32.vlgmr.msra.gmra.mrb[8].mxu0 %v1036_v31  ;;  %v1038_v36 = vsub.f32 %v1034_v32, %v3346_v6  ;;  %v1314_v6 = vld [vmem:[#allocation10] sm:$0xff] }
 0x2a6   : > { %v1039_v35 = vsub.f32 %v1035_v34, %v3340_v3  ;;  %v1269_v37 = vsub.s32 0, %v1268_v4  ;;  %v1277_v3 = vsub.s32 2, %v1268_v4  ;;  %v2512_v44 = vpack.c.bf16 %v1315_v43, %v1314_v6  ;;  %v1407_v6 = vld [vmem:[#allocation10 + $0x88] sm:$0xff] }
 0x2a7   : > { %v1273_v63 = vsub.s32 1, %v1268_v4 }
 0x2a8   : > { %2045 = vmatprep.mubr.msk.f32.mxu1 %vm619_vm2, %v1039_v35  ;;  %2048 = vmatprep.mubr.msk.f32.mxu0 %vm619_vm2, %v1039_v35  ;;  %v1270_v40 = vrot.slane %v1265_v39, %v1269_v37  ;;  %v3459_v41 = vrot.slane %v1265_v39, %v1277_v3  ;;  %v426_v35 = vld [vmem:[#allocation7] sm:$0xff] }
 0x2a9   : > { %1178 = vmatmul.mubr.f32.gmra.mrb[6].mxu1 %v1038_v36  ;;  %1254 = vmatmul.mubr.f32.gmra.mrb[10].mxu0 %v1038_v36  ;;  %v1274_v5 = vrot.slane %v1265_v39, %v1273_v63  ;;  %v427_v39 = vld [vmem:[#allocation7 + $0x8] sm:$0xff] }
 0x2aa   : > { %2150 = vmatprep.mubr.msk.f32.mxu0 %vm483_vm0, %v3350_v8  ;;  %2513 = vmatprep.subr.bf16.mxu1 %v2512_v44  ;;  %v1318_v8 = vld [vmem:[#allocation10 + $0x20] sm:$0xff] }
 0x2ab   : > { %2515 = vmatpush3.bf16.msra.mxu1 %v2512_v44  ;;  %v2520_v50 = vpack.c.bf16 %v1319_v48, %v1318_v8  ;;  %v1409_v8 = vld [vmem:[#allocation10 + $0x98] sm:$0xff] }
 0x2ac   : > { %2517 = vmatprep.subr.bf16.mxu1 %v2516_v47 }
 0x2af   : > { %2519 = vmatpush3.bf16.msra.mxu1 %v2516_v47  ;;  %v1408_v47 = vld [vmem:[#allocation10 + $0x90] sm:$0xff] }
 0x2b0   : > { %2521 = vmatprep.subr.bf16.mxu1 %v2520_v50  ;;  %v2484_v48 = vpack.c.bf16 %v1409_v8, %v1408_v47 }
 0x2b3   : > { %2523 = vmatpush3.bf16.msra.mxu1 %v2520_v50  ;;  %v1410_v50 = vld [vmem:[#allocation10 + $0xa0] sm:$0xff] }
 0x2b4   : > { %2525 = vmatprep.subr.bf16.mxu1 %v2524_v55  ;;  %v2488_v52 = vpack.c.bf16 %v1411_v51, %v1410_v50 }
 0x2b7   : > { %2527 = vmatpush3.bf16.msra.mxu1 %v2524_v55  ;;  %v1412_v55 = vld [vmem:[#allocation10 + $0xb0] sm:$0xff] }
 0x2b8   : > { %2529 = vmatprep.subr.bf16.mxu1 %v2528_v58  ;;  %v2492_v57 = vpack.c.bf16 %v1413_v56, %v1412_v55 }
 0x2bb   : > { %2531 = vmatpush3.bf16.msra.mxu1 %v2528_v58  ;;  %v1414_v58 = vld [vmem:[#allocation10 + $0xc0] sm:$0xff] }
 0x2bc   : > { %2533 = vmatprep.subr.bf16.mxu1 %v2532_v49  ;;  %v2496_v42 = vpack.c.bf16 %v1415_v38, %v1414_v58  ;;  %v1773_v58 = vld [vmem:[#allocation11 + $0x28] sm:$0xff] }
 0x2bf   : > { %2535 = vmatpush3.bf16.msra.mxu1 %v2532_v49  ;;  %v1416_v49 = vld [vmem:[#allocation10 + $0xd0] sm:$0xff] }
 0x2c0   : > { %2537 = vmatprep.subr.bf16.mxu1 %v2536_v59  ;;  %v2500_v54 = vpack.c.bf16 %v1417_v53, %v1416_v49  ;;  %v1775_v49 = vld [vmem:[#allocation11 + $0x38] sm:$0xff] }
 0x2c3   : > { %2539 = vmatpush3.bf16.msra.mxu1 %v2536_v59  ;;  %v1418_v59 = vld [vmem:[#allocation10 + $0xe0] sm:$0xff] }
 0x2c4   : > { %2541 = vmatprep.subr.bf16.mxu1 %v2540_v62 }
 0x2c7   : > { %2543 = vmatpush3.bf16.msra.mxu1 %v2540_v62  ;;  %v1421_v62 = vld [vmem:[#allocation10 + $0xf8] sm:$0xff] }
 0x2c8   : > { %v2508_v63 = vpack.c.bf16 %v1421_v62, %v1420_v61  ;;  %v1779_v61 = vld [vmem:[#allocation11 + $0x58] sm:$0xff]  ;;  %v1780_v62 = vld [vmem:[#allocation11 + $0x60] sm:$0xff] }
 0x378   : > { %v1173_v7 = vpop.f32.mrb[4].mxu1  ;;  %v1250_v9 = vpop.f32.mrb[8].mxu0 }
 0x379   : > { %v1282_v10 = vadd.f32 %v1270_v40, %v1173_v7  ;;  %v1261_v11 = vadd.f32 %v1250_v9, %v3442_v20  ;;  %v1175_v12 = vpop.f32.mrb[5].mxu1  ;;  %v1252_v13 = vpop.f32.mrb[9].mxu0  ;;  %v1653_v7 = vld [vmem:[#allocation10 + $0x108] sm:$0xff]  ;;  %v1654_v9 = vld [vmem:[#allocation10 + $0x110] sm:$0xff] }
 0x37a   : > { %v1283_v14 = vadd.f32 %v1274_v5, %v1175_v12  ;;  %v1656_v13 = vld [vmem:[#allocation10 + $0x120] sm:$0xff] }
 0x37b   : > { %v2049_v15 = vmul.f32 -1.442695, %v1282_v10  ;;  %v3463_v16 = vadd.f32 %v3459_v41, %v1261_v11  ;;  %v1655_v11 = vld [vmem:[#allocation10 + $0x118] sm:$0xff] }
 0x37c   : > { %v2051_v17 = vmul.f32 -1.442695, %v1283_v14  ;;  %v1179_v1 = vpop.f32.mrb[6].mxu1  ;;  %v1255_v18 = vpop.f32.mrb[10].mxu0  ;;  %v2552_v12 = vpack.c.bf16 %v1655_v11, %v1654_v9  ;;  %v1657_v14 = vld [vmem:[#allocation10 + $0x128] sm:$0xff] }
 0x37d   : > { %2731 = vpow2.f32 %v2049_v15  ;;  %v1285_v19 = vadd.f32 %v1270_v40, %v1179_v1  ;;  %v1264_v21 = vadd.f32 %v1255_v18, %v3444_v23  ;;  %v1181_v22 = vpop.f32.mrb[7].mxu1  ;;  %v1257_v0 = vpop.f32.mrb[11].mxu0  ;;  %v2556_v15 = vpack.c.bf16 %v1657_v14, %v1656_v13  ;;  %v1659_v1 = vld [vmem:[#allocation10 + $0x138] sm:$0xff] }
 0x37e   : > { %2733 = vpow2.f32 %v2051_v17  ;;  %v1286_v24 = vadd.f32 %v1274_v5, %v1181_v22  ;;  %v1652_v5 = vld [vmem:[#allocation10 + $0x100] sm:$0xff]  ;;  %v1658_v17 = vld [vmem:[#allocation10 + $0x130] sm:$0xff]  ;;  %v2057_v11 = vld [vmem:[%s3561_s6] ss:$0 sm:$0xff] }
 0x37f   : > { %v2050_v25 = vmul.f32 -1.442695, %v1285_v19  ;;  %v3467_v20 = vadd.f32 %v3459_v41, %v1264_v21  ;;  %v1406_v41 = vld [vmem:[#allocation10 + $0x80] sm:$0xff]  ;;  %v2548_v10 = vpack.c.bf16 %v1653_v7, %v1652_v5  ;;  %v2560_v18 = vpack.c.bf16 %v1659_v1, %v1658_v17  ;;  %v1661_v21 = vld [vmem:[#allocation10 + $0x148] sm:$0xff]  ;;  %v1662_v0 = vld [vmem:[#allocation10 + $0x150] sm:$0xff] }
 0x380   : > { %v2052_v26 = vmul.f32 -1.442695, %v1286_v24  ;;  %v2480_v46 = vpack.c.bf16 %v1407_v6, %v1406_v41  ;;  %v1660_v19 = vld [vmem:[#allocation10 + $0x140] sm:$0xff]  ;;  %v1663_v24 = vld [vmem:[#allocation10 + $0x158] sm:$0xff]  ;;  %v1770_v41 = vld [vmem:[#allocation11 + $0x10] sm:$0xff] }
 0x381   : > { %2735 = vpow2.f32 %v2050_v25  ;;  %2549 = vmatprep.subr.bf16.mxu1 %v2548_v10  ;;  %v2564_v22 = vpack.c.bf16 %v1661_v21, %v1660_v19  ;;  %v2568_v25 = vpack.c.bf16 %v1663_v24, %v1662_v0  ;;  %v1782_v5 = vld [vmem:[#allocation11 + $0x70] sm:$0xff]  ;;  %v1783_v7 = vld [vmem:[#allocation11 + $0x78] sm:$0xff] }
 0x382   : > { %2737 = vpow2.f32 %v2052_v26  ;;  %v2608_v9 = vpack.c.bf16 %v1783_v7, %v1782_v5 }
 0x387   : > { %v2732_v27 = vpop.eup %2731 }
 0x388   : > { %v2734_v28 = vpop.eup %2733  ;;  %v1294_v29 = vadd.f32 1.0, %v2732_v27 }
 0x389   : > { %v1306_v31 = vadd.f32 1.0, %v2734_v28 }
 0x38a   : > { %2739 = vrcp.f32 %v1294_v29  ;;  %v2751_v29 = vld [vmem:[#allocation2] sm:$0xff] }
 0x38b   : > { %v2736_v32 = vpop.eup %2735  ;;  %2741 = vrcp.f32 %v1306_v31  ;;  %v2752_v31 = vld [vmem:[#allocation2 + $0x8] sm:$0xff] }
 0x38c   : > { %v2738_v33 = vpop.eup %2737  ;;  %v1295_v23 = vadd.f32 1.0, %v2736_v32  ;;  %v1664_v32 = vld [vmem:[#allocation10 + $0x160] sm:$0xff] }
 0x38d   : > { %v1307_v34 = vadd.f32 1.0, %v2738_v33  ;;  %v1665_v33 = vld [vmem:[#allocation10 + $0x168] sm:$0xff] }
 0x38e   : > { %2743 = vrcp.f32 %v1295_v23  ;;  %v2572_v23 = vpack.c.bf16 %v1665_v33, %v1664_v32 }
 0x38f   : > { %2745 = vrcp.f32 %v1307_v34  ;;  %v1666_v34 = vld [vmem:[#allocation10 + $0x170] sm:$0xff] }
 0x394   : > { %v3469_v36 = vpop.eup %2739 }
 0x395   : > { %v2742_v2 = vpop.eup %2741  ;;  %v3472_v4 = vmul.f32 %v3469_v36, %v426_v35 }
 0x396   : > { %v3474_v37 = vmul.f32 %v2742_v2, %v426_v35  ;;  %v1667_v35 = vld [vmem:[#allocation10 + $0x178] sm:$0xff] }
 0x397   : > { %v2576_v2 = vpack.c.bf16 %v1667_v35, %v1666_v34 }
 0x398   : > { %v3476_v40 = vpop.eup %2743  ;;  %2220 = vmatprep.mubr.f32.mxu1 %v3474_v37 }
 0x399   : > { %v2746_v3 = vpop.eup %2745  ;;  %v3480_v43 = vmul.f32 %v3476_v40, %v427_v39  ;;  %v1761_v19 = vsub.f32 1.0, %v3476_v40 }
 0x39a   : > { %v3482_v44 = vmul.f32 %v2746_v3, %v427_v39  ;;  %v1768_v39 = vld [vmem:[#allocation11] sm:$0xff]  ;;  %v1769_v3 = vld [vmem:[#allocation11 + $0x8] sm:$0xff] }
 0x39b   : > { %v2580_v6 = vpack.c.bf16 %v1769_v3, %v1768_v39 }
 0x39c   : > { %2221 = vmatmul.mubr.f32.vlgmr.msra.gmra.mrb[12].mxu1 %v3482_v44  ;;  %v2476_v45 = vpack.c.bf16 %v3482_v44, %v3474_v37 }
 0x39d   : > { %2551 = vmatpush3.bf16.msra.mxu1 %v2548_v10 }
 0x39e   : > { %2477 = vmatprep.subr.bf16.mxu0 %v2476_v45  ;;  %2553 = vmatprep.subr.bf16.mxu1 %v2552_v12 }
 0x39f   : > { %2479 = vmatpush3.bf16.msra.mxu0 %v2476_v45  ;;  %v1771_v45 = vld [vmem:[#allocation11 + $0x18] sm:$0xff] }
 0x3a0   : > { %2481 = vmatprep.subr.bf16.mxu0 %v2480_v46 }
 0x3a1   : > { %2555 = vmatpush3.bf16.msra.mxu1 %v2552_v12 }
 0x3a2   : > { %2151 = vmatmul.mubr.msk.f32.vlgmr.msra.gmra.mrb[12].mxu0 %vm483_vm0, %v3356_v30  ;;  %v1419_v30 = vld [vmem:[#allocation10 + $0xe8] sm:$0xff]  ;;  %2557 = vmatprep.subr.bf16.mxu1 %v2556_v15 }
 0x3a3   : > { %2483 = vmatpush3.bf16.msra.mxu0 %v2480_v46  ;;  %v2504_v60 = vpack.c.bf16 %v1419_v30, %v1418_v59  ;;  %v2584_v46 = vpack.c.bf16 %v1771_v45, %v1770_v41  ;;  %v1777_v59 = vld [vmem:[#allocation11 + $0x48] sm:$0xff]  ;;  %v1778_v30 = vld [vmem:[#allocation11 + $0x50] sm:$0xff] }
 0x3a4   : > { %2485 = vmatprep.subr.bf16.mxu0 %v2484_v48 }
 0x3a5   : > { %2559 = vmatpush3.bf16.msra.mxu1 %v2556_v15 }
 0x3a6   : > { %2561 = vmatprep.subr.bf16.mxu1 %v2560_v18 }
 0x3a7   : > { %2487 = vmatpush3.bf16.msra.mxu0 %v2484_v48 }
 0x3a8   : > { %2489 = vmatprep.subr.bf16.mxu0 %v2488_v52 }
 0x3a9   : > { %2563 = vmatpush3.bf16.msra.mxu1 %v2560_v18 }
 0x3aa   : > { %2565 = vmatprep.subr.bf16.mxu1 %v2564_v22 }
 0x3ab   : > { %2491 = vmatpush3.bf16.msra.mxu0 %v2488_v52 }
 0x3ac   : > { %2493 = vmatprep.subr.bf16.mxu0 %v2492_v57 }
 0x3ad   : > { %2567 = vmatpush3.bf16.msra.mxu1 %v2564_v22  ;;  %v1760_v22 = vsub.f32 1.0, %v3469_v36 }
 0x3ae   : > { %2569 = vmatprep.subr.bf16.mxu1 %v2568_v25 }
 0x3af   : > { %2495 = vmatpush3.bf16.msra.mxu0 %v2492_v57  ;;  %v1772_v57 = vld [vmem:[#allocation11 + $0x20] sm:$0xff] }
 0x3b0   : > { %2497 = vmatprep.subr.bf16.mxu0 %v2496_v42  ;;  %v2588_v38 = vpack.c.bf16 %v1773_v58, %v1772_v57 }
 0x3b1   : > { %2571 = vmatpush3.bf16.msra.mxu1 %v2568_v25 }
 0x3b2   : > { %2573 = vmatprep.subr.bf16.mxu1 %v2572_v23 }
 0x3b3   : > { %2499 = vmatpush3.bf16.msra.mxu0 %v2496_v42  ;;  %v1774_v42 = vld [vmem:[#allocation11 + $0x30] sm:$0xff] }
 0x3b4   : > { %2501 = vmatprep.subr.bf16.mxu0 %v2500_v54  ;;  %v2592_v53 = vpack.c.bf16 %v1775_v49, %v1774_v42 }
 0x3b5   : > { %2575 = vmatpush3.bf16.msra.mxu1 %v2572_v23 }
 0x3b6   : > { %2577 = vmatprep.subr.bf16.mxu1 %v2576_v2 }
 0x3b7   : > { %2503 = vmatpush3.bf16.msra.mxu0 %v2500_v54  ;;  %v1776_v54 = vld [vmem:[#allocation11 + $0x40] sm:$0xff] }
 0x3b8   : > { %2505 = vmatprep.subr.bf16.mxu0 %v2504_v60 }
 0x3b9   : > { %2579 = vmatpush3.bf16.msra.mxu1 %v2576_v2 }
 0x3bb   : > { %2507 = vmatpush3.bf16.msra.mxu0 %v2504_v60  ;;  %v2596_v60 = vpack.c.bf16 %v1777_v59, %v1776_v54 }
 0x3bc   : > { %2509 = vmatprep.subr.bf16.mxu0 %v2508_v63 }
 0x3bf   : > { %2511 = vmatpush3.bf16.msra.mxu0 %v2508_v63 }
 0x475   : > { %v2152_v26 = vpop.f32.mrb[12].mxu0 }
 0x476   : > { %v1396_v27 = vpop.f32.mrb[13].mxu0 }
 0x477   : > { %v2544_v28 = vpack.c.bf16 %v2152_v26, %v1396_v27  ;;  %2185 = vmatprep.mubr.f32.mxu0 %v1396_v27 }
 0x478   : > { %2186 = vmatmul.mubr.f32.vlgmr.msra.gmra.mrb[14].mxu0 %v2152_v26 }
 0x479   : > { %2545 = vmatprep.subr.bf16.mxu0 %v2544_v28  ;;  %2227 = vmatprep.mubr.msk.f32.mxu0 %vm483_vm0, %v2751_v29 }
 0x47a   : > { %2547 = vmatpush3.bf16.msra.mxu0 %v2544_v28 }
 0x47b   : > { %2581 = vmatprep.subr.bf16.mxu0 %v2580_v6 }
 0x47d   : > { %2228 = vmatmul.mubr.msk.f32.vlgmr.msra.gmra.mrb[16].mxu0 %vm483_vm0, %v2752_v31 }
 0x47e   : > { %2583 = vmatpush3.bf16.msra.mxu0 %v2580_v6 }
 0x47f   : > { %2585 = vmatprep.subr.bf16.mxu0 %v2584_v46 }
 0x482   : > { %2587 = vmatpush3.bf16.msra.mxu0 %v2584_v46 }
 0x483   : > { %2589 = vmatprep.subr.bf16.mxu0 %v2588_v38 }
 0x486   : > { %2591 = vmatpush3.bf16.msra.mxu0 %v2588_v38 }
 0x487   : > { %2593 = vmatprep.subr.bf16.mxu0 %v2592_v53 }
 0x48a   : > { %2595 = vmatpush3.bf16.msra.mxu0 %v2592_v53 }
 0x48b   : > { %2597 = vmatprep.subr.bf16.mxu0 %v2596_v60 }
 0x48e   : > { %2599 = vmatpush3.bf16.msra.mxu0 %v2596_v60 }
 0x54b   : > { %v2187_v47 = vpop.f32.mrb[14].mxu0 }
 0x54c   : > { %v1488_v8 = vpop.f32.mrb[15].mxu0 }
 0x550   : > { %v2229_v48 = vpop.f32.mrb[16].mxu0 }
 0x551   : > { %v1648_v50 = vmul.f32 2.0, %v2229_v48  ;;  %v1638_v51 = vpop.f32.mrb[17].mxu0 }
 0x552   : > { %v1647_v52 = vmul.f32 2.0, %v1638_v51 }
 0x553   : > { %v1650_v56 = vsub.f32 %v1648_v50, %v3482_v44  ;;  %v1781_v44 = vld [vmem:[#allocation11 + $0x68] sm:$0xff] }
 0x554   : > { %v1649_v55 = vsub.f32 %v1647_v52, %v3474_v37  ;;  %v2600_v37 = vpack.c.bf16 %v1779_v61, %v1778_v30  ;;  %v2604_v63 = vpack.c.bf16 %v1781_v44, %v1780_v62 }
 0x556   : > { %2262 = vmatprep.mubr.f32.mxu1 %v1649_v55  ;;  %2601 = vmatprep.subr.bf16.mxu0 %v2600_v37 }
 0x557   : > { %2263 = vmatmul.mubr.f32.vlgmr.msra.gmra.mrb[12].mxu1 %v1650_v56  ;;  %2603 = vmatpush3.bf16.msra.mxu0 %v2600_v37 }
 0x558   : > { %2605 = vmatprep.subr.bf16.mxu0 %v2604_v63 }
 0x55b   : > { %2607 = vmatpush3.bf16.msra.mxu0 %v2604_v63 }
 0x55c   : > { %2609 = vmatprep.subr.bf16.mxu0 %v2608_v9 }
 0x55f   : > { %2611 = vmatpush3.bf16.msra.mxu0 %v2608_v9 }
 0x62a   : > { %v2264_v10 = vpop.f32.mrb[12].mxu1 }
 0x62b   : > { %v2612_v12 = vadd.f32 %v2264_v10, %v2187_v47  ;;  %v1734_v13 = vpop.f32.mrb[13].mxu1 }
 0x62c   : > { %v2613_v14 = vadd.f32 %v1734_v13, %v1488_v8 }
 0x62d   : > { %v1753_v15 = vadd.f32 %v2612_v12, %v2057_v11 }
 0x62e   : > { %v1752_v17 = vadd.f32 %v2613_v14, %v2057_v11 }
 0x62f   : > { %v1755_v1 = vadd.f32 %v1753_v15, %v3467_v20 }
 0x630   : > { %v1754_v18 = vadd.f32 %v1752_v17, %v3463_v16  ;;  %v2058_v16 = vld [vmem:[%s3563_s8] ss:$0 sm:$0xff] }
 0x631   : > { %2747 = vtanh.f32 %v1755_v1 }
 0x632   : > { %2749 = vtanh.f32 %v1754_v18 }
 0x63b   : > { %v2748_v21 = vpop.eup %2747 }
 0x63c   : > { %v2750_v0 = vpop.eup %2749  ;;  %v1763_v24 = vmul.f32 %v2748_v21, %v1761_v19 }
 0x63d   : > { %v1762_v25 = vmul.f32 %v2750_v0, %v1760_v22 }
 0x63e   : > { %v1765_v26 = vadd.f32 %v1763_v24, %v3480_v43 }
 0x63f   : > { %v1764_v27 = vadd.f32 %v1762_v25, %v3472_v4 }
 0x640   : > { %v1767_v20 = vmax.f32 %v1765_v26, 0.0 }
 0x641   : > { %v1766_v28 = vmax.f32 %v1764_v27, 0.0 }
 0x643   : > { %2297 = vmatprep.mubr.f32.mxu0 %v1766_v28 }
 0x644   : > { %2298 = vmatmul.mubr.f32.vlgmr.msra.gmra.mrb[18].mxu0 %v1767_v20 }
 0x717   : > { %v2299_v36 = vpop.f32.mrb[18].mxu0 }
 0x718   : > { %v1863_v4 = vadd.f32 %v2299_v36, %v2058_v16  ;;  %v1857_v40 = vpop.f32.mrb[19].mxu0 }
 0x719   : > { %v1858_v43 = vadd.f32 %v2058_v16, %v1857_v40 }
 0x71a   : > { %1867 = vst [vmem:[%s423_s2 + $0x8] sm:$0xff] %v1863_v4 }
 0x71b   : > { %1866 = vst [vmem:[%s423_s2] sm:$0xff] %v1858_v43 }
 0x71c   : > { %2936 = shalt.err (!%p2933_p10)
}
 0x71d   : > { %s2937_s14 = scalar_lea.hbm %s3512_s19, 256  ;;  %s2941_s28 = scalar_lea.hbm %s3564_s9, 2048 }
 0x71e   : > { %p2938_p2 = scmp.ne.s32.totalorder %s3512_s19, %s2937_s14  ;;  %p2942_p8 = scmp.lt.u32.totalorder %s3512_s19, %s3564_s9 }
 0x71f   : > { %p2943_p13 = scmp.lt.u32.totalorder %s2941_s28, %s2937_s14  ;;  %p2945_p7 = scmp.lt.u32.totalorder %s2937_s14, %s3512_s19 }
 0x720   : > { %p2939_p4 = pnand %p2938_p2, %p3263_p11 }
 0x721   : > { %p2944_p3 = por %p2943_p13, %p2942_p8 }
 0x722   : > { %p2940_p6 = pneg %p2939_p4 }
 0x723   : > { %p2946_p9 = por %p2945_p7, %p2944_p3 }
 0x725   : > { %p2947_p12 = pnand %p2946_p9, %p2940_p6 }
 0x727   : > { %2950 = shalt.err (!%p2947_p12)
}
 0x728   : > { %s3022_s22 = smov 128   ;;  %s3023_s24 = smov 8  }
 0x729   : > { %2646 = dma.vmem_to_hbm [thread:$0]  (%p3263_p11), %s3507_s25, 256, %s3512_s19, %s1869_s30, %s3022_s22, %s3022_s22, %s3023_s24  }
 0x72a PF: > { %s3598_s15 = sld [smem:[#allocation20_spill]]  ;;  %s3599_s13 = sld [smem:[#allocation21_spill]] }
 0x72b   : > { %p2683_p0 = scmp.ge.s32.totalorder %s3005_s12, 2 }
 0x730   : > { %s1897_s17 = sand.u32 1, %s3598_s15   ;;  %p3600_p5 = scmp.ne.s32.totalorder %s3599_s13, 0 }
 0x731   : > { %s1898_s23 = scalar_lea.sflag [#allocation4], %s1897_s17 }
 0x732   : > { %p2669_p1 = pnand %p2683_p0, %p3600_p5 }
 0x734   : > { %2988 = dma.done.wait (!%p2669_p1), %s1898_s23, 256  }
 0x735   : > { %2990 = vsyncadd (!%p2669_p1), %s1898_s23, 4294967040  ;;  %p25_p10 = scmp.ge.s32.totalorder %s3228_s26, 10   ;;  %s3601_s30 = smov %s2997_s10 }
 0x736   : > { %s3602_s10 = smov %s3001_s11  ;;  %s3603_s11 = smov %s3259_s29 }
 0x737   : > { %s3604_s12 = smov %s3228_s26  ;;  %27 = sbr.rel (!%p25_p10) target bundleno = 10 (0xa), region = 126 }
 0x73e   :  { %1903 = vsyncpa [#allocation3], 1 }
 0x73f   :  { %1905 = vsyncpa [#allocation3 + $0x1], 1 }
 0x740   :  { %1906 = vsyncpa [#allocation6], 1 }
 0x741   :  { %1908 = vsyncpa [#allocation6 + $0x1], 1 }
 0x742   :  { %1909 = vsyncpa [#allocation9], 1 }
 0x743   :  { %1910 = vsyncpa [#allocation12], 1 }
 0x744   :  { %1911 = vsyncpa [#allocation4], 1 }
 0x745   :  { %1913 = vsyncpa [#allocation4 + $0x1], 1 }

</bundles_post_ra>
